<compile_context>
chip_gen: v7x
topology: tpu7x:2x2x1
jax: 0.10.0
libtpu: 0.0.40
codegen_flags: <defaults>
</compile_context>

<pallas_src>
import jax
import jax.numpy as jnp
import numpy as np
from jax.experimental import pallas as pl
from jax.experimental.pallas import tpu as pltpu

EPS = 1e-5   # nn.BatchNorm2d default
LANE = 128


def _round_up(v, m):
    return (v + m - 1) // m * m


def _zero_halo(pad_ref, Hh, Wh, CP):
    """Zero only the 1-pixel halo of the (Hh+2, Wh+2, CP) padded scratch."""
    zrow = jnp.zeros((1, Wh + 2, CP), jnp.float32)
    zcol = jnp.zeros((Hh + 2, 1, CP), jnp.float32)
    pad_ref[0:1, :, :] = zrow
    pad_ref[Hh + 1:Hh + 2, :, :] = zrow
    pad_ref[:, 0:1, :] = zcol
    pad_ref[:, Wh + 1:Wh + 2, :] = zcol


def _conv3x3(pad_ref, patch_ref, w_ref, Hh, Wh, CP):
    """3x3 'SAME' conv of the padded scratch as ONE im2col MXU matmul.

    patch_ref: (Hh*Wh, 9*CP) VMEM scratch. 9 lane-aligned tap stores, then a single
    (M, 9*CP) x (9*CP, CP) dot; K and N are full 128-lane MXU tiles.
    """
    M = Hh * Wh
    for dy in range(3):
        for dx in range(3):
            t = dy * 3 + dx
            tap = pad_ref[dy:dy + Hh, dx:dx + Wh, :]        # (Hh, Wh, CP), lane-aligned
            patch_ref[:, t * CP:(t + 1) * CP] = tap.reshape(M, CP)
    return jnp.dot(patch_ref[...], w_ref[...], preferred_element_type=jnp.float32)


def _pool_conv1_kernel(x_ref, w_ref, y_ref, st_ref, pad_ref, patch_ref):
    # x_ref: (1, Hh, 2, Wh, 2*CP) -- one image, NHWC with the 2x2 pool taps split out.
    Hp2, Wp2, CP = pad_ref.shape
    Hh, Wh = Hp2 - 2, Wp2 - 2

    x = x_ref[0]                                            # (Hh, 2, Wh, 2*CP)
    rows = jnp.maximum(x[:, 0, :, :], x[:, 1, :, :])        # max over the two H taps
    pooled = jnp.maximum(rows[..., :CP], rows[..., CP:])    # (Hh, Wh, CP)

    _zero_halo(pad_ref, Hh, Wh, CP)
    pad_ref[1:Hh + 1, 1:Wh + 1, :] = pooled
    y = _conv3x3(pad_ref, patch_ref, w_ref, Hh, Wh, CP)     # (M, CP) pre-BN conv1

    y_ref[0] = y
    st_ref[0, 0:1, :] = jnp.sum(y, axis=0, keepdims=True)
    st_ref[0, 1:2, :] = jnp.sum(y * y, axis=0, keepdims=True)


def _bn_conv2_kernel(y1_ref, sc_ref, sh_ref, w_ref, y_ref, st_ref, pad_ref, patch_ref):
    Hp2, Wp2, CP = pad_ref.shape
    Hh, Wh = Hp2 - 2, Wp2 - 2

    h = jnp.maximum(y1_ref[0] * sc_ref[...] + sh_ref[...], 0.0)   # BN1 apply + ReLU
    _zero_halo(pad_ref, Hh, Wh, CP)
    pad_ref[1:Hh + 1, 1:Wh + 1, :] = h.reshape(Hh, Wh, CP)
    y = _conv3x3(pad_ref, patch_ref, w_ref, Hh, Wh, CP)           # (M, CP) pre-BN conv2

    y_ref[0] = y
    st_ref[0, 0:1, :] = jnp.sum(y, axis=0, keepdims=True)
    st_ref[0, 1:2, :] = jnp.sum(y * y, axis=0, keepdims=True)


def _bn_relu_kernel(y2_ref, sc_ref, sh_ref, o_ref):
    o_ref[0] = jnp.maximum(y2_ref[0] * sc_ref[...] + sh_ref[...], 0.0)


def down_forward(x, params):
    """x: (N, Cin, H, W) float32 NCHW. Returns (N, Cout, H//2, W//2) NCHW."""
    N, Cin, H, W = x.shape
    assert H % 2 == 0 and W % 2 == 0, "2x2 max-pool assumes even H and W"
    Hh, Wh = H // 2, W // 2
    M = Hh * Wh
    w1, b1, g1, be1, w2, b2, g2, be2 = params
    Cout = w1.shape[-1]
    del b1, b2                       # exactly cancelled by training-mode BatchNorm
    CP = _round_up(max(Cin, Cout), LANE)
    f32 = jnp.float32

    # One NCHW->NHWC transpose + channel pad; the (Hh,2,Wh,2*CP) pool-tap view is a
    # pure metadata reshape.
    x_nhwc = jnp.transpose(x, (0, 2, 3, 1)).astype(f32)
    xp = jnp.zeros((N, H, W, CP), f32).at[..., :Cin].set(x_nhwc)
    x_view = xp.reshape(N, Hh, 2, Wh, 2 * CP)

    # Weights: HWIO -> (9*CP, CP), zero-padded so im2col K-rows / output lanes are
    # tile-aligned (zero rows/cols keep the padded channels identically zero).
    def pack_w(w, cin):
        wr = w.reshape(9, cin, Cout).astype(f32)
        return jnp.zeros((9, CP, CP), f32).at[:, :cin, :Cout].set(wr).reshape(9 * CP, CP)

    w1p, w2p = pack_w(w1, Cin), pack_w(w2, Cout)

    def pad_c(v):
        return jnp.zeros((1, CP), f32).at[0, :Cout].set(v.astype(f32))

    g1p, be1p, g2p, be2p = pad_c(g1), pad_c(be1), pad_c(g2), pad_c(be2)

    # VMEM budget from block sizes (inputs/outputs double-buffered) + 2x headroom.
    bpe = 4
    x_blk = Hh * 2 * Wh * 2 * CP * bpe
    w_blk = 9 * CP * CP * bpe
    y_blk = M * CP * bpe
    st_blk = 2 * CP * bpe
    scratch = ((Hh + 2) * (Wh + 2) * CP + M * 9 * CP) * bpe

    def cparams(need_bytes):
        return pltpu.CompilerParams(
            dimension_semantics=("parallel",),
            vmem_limit_bytes=int(min(max(2 * need_bytes, 4 * 1024 * 1024),
                                     32 * 1024 * 1024)))

    img_spec = pl.BlockSpec((1, M, CP), lambda n: (n, 0, 0))
    st_spec = pl.BlockSpec((1, 2, CP), lambda n: (n, 0, 0))
    vec_spec = pl.BlockSpec((1, CP), lambda n: (0, 0))
    w_spec = pl.BlockSpec((9 * CP, CP), lambda n: (0, 0))

    # ---- kernel 1: pool + conv1 + partial BN1 stats ------------------------------
    y1, st1 = pl.pallas_call(
        _pool_conv1_kernel,
        out_shape=(jax.ShapeDtypeStruct((N, M, CP), f32),
                   jax.ShapeDtypeStruct((N, 2, CP), f32)),
        grid=(N,),
        in_specs=[pl.BlockSpec((1, Hh, 2, Wh, 2 * CP), lambda n: (n, 0, 0, 0, 0)),
                  w_spec],
        out_specs=(img_spec, st_spec),
        scratch_shapes=[pltpu.VMEM((Hh + 2, Wh + 2, CP), f32),
                        pltpu.VMEM((M, 9 * CP), f32)],
        compiler_params=cparams(2 * (x_blk + w_blk + y_blk + st_blk) + scratch),
    )(x_view, w1p)

    cnt = jnp.float32(N * M)

    def bn_affine(st, gp, bp):
        s = jnp.sum(st[:, 0, :], axis=0)
        ss = jnp.sum(st[:, 1, :], axis=0)
        mean = s / cnt
        var = jnp.maximum(ss / cnt - mean * mean, 0.0)     # biased variance
        scale = gp[0] * jax.lax.rsqrt(var + EPS)
        shift = bp[0] - mean * scale
        return scale.reshape(1, CP), shift.reshape(1, CP)

    sc1, sh1 = bn_affine(st1, g1p, be1p)

    # ---- kernel 2: BN1 apply + ReLU + conv2 + partial BN2 stats ------------------
    y2, st2 = pl.pallas_call(
        _bn_conv2_kernel,
        out_shape=(jax.ShapeDtypeStruct((N, M, CP), f32),
                   jax.ShapeDtypeStruct((N, 2, CP), f32)),
        grid=(N,),
        in_specs=[img_spec, vec_spec, vec_spec, w_spec],
        out_specs=(img_spec, st_spec),
        scratch_shapes=[pltpu.VMEM((Hh + 2, Wh + 2, CP), f32),
                        pltpu.VMEM((M, 9 * CP), f32)],
        compiler_params=cparams(2 * (2 * y_blk + 2 * CP * bpe + w_blk + st_blk) + scratch),
    )(y1, sc1, sh1, w2p)

    sc2, sh2 = bn_affine(st2, g2p, be2p)

    # ---- kernel 3: BN2 apply + ReLU -> lane-dense output slab --------------------
    out_slab = pl.pallas_call(
        _bn_relu_kernel,
        out_shape=jax.ShapeDtypeStruct((N, M, CP), f32),
        grid=(N,),
        in_specs=[img_spec, vec_spec, vec_spec],
        out_specs=img_spec,
        compiler_params=cparams(4 * y_blk + 2 * 2 * CP * bpe),
    )(y2, sc2, sh2)

    # Lane-dense slab -> NCHW view (tiny wrapper-side slice/reshape/transpose).
    out = out_slab[:, :, :Cout].reshape(N, Hh, Wh, Cout)
    return jnp.transpose(out, (0, 3, 1, 2))


def reference(x, params):
    """Pure-JAX reference mirroring PyTorch Down.forward in training mode."""
    w1, b1, g1, be1, w2, b2, g2, be2 = params
    N, C, H, W = x.shape
    pooled = x.reshape(N, C, H // 2, 2, W // 2, 2).max(axis=(3, 5))

    def conv_bn_relu(h, w_hwio, b, g, be):
        w_oihw = jnp.transpose(w_hwio, (3, 2, 0, 1))
        y = jax.lax.conv_general_dilated(
            h, w_oihw, (1, 1), 'SAME',
            dimension_numbers=('NCHW', 'OIHW', 'NCHW'))
        y = y + b[None, :, None, None]
        mean = y.mean(axis=(0, 2, 3), keepdims=True)
        var = ((y - mean) ** 2).mean(axis=(0, 2, 3), keepdims=True)
        yn = (y - mean) / jnp.sqrt(var + EPS)
        yn = yn * g[None, :, None, None] + be[None, :, None, None]
        return jnp.maximum(yn, 0.0)

    h = conv_bn_relu(pooled, w1, b1, g1, be1)
    return conv_bn_relu(h, w2, b2, g2, be2)


if __name__ == "__main__":
    N, Cin, Cout, H, W = 2, 4, 8, 16, 16

    key = jax.random.PRNGKey(0)
    ks = jax.random.split(key, 7)
    x = jax.random.normal(ks[0], (N, Cin, H, W), jnp.float32)

    # deterministic synthetic parameters (shapes as in Down(4, 8))
    w1 = jax.random.normal(ks[1], (3, 3, Cin, Cout), jnp.float32) * 0.1   # HWIO
    b1 = jax.random.normal(ks[2], (Cout,), jnp.float32) * 0.1
    g1 = jnp.ones((Cout,), jnp.float32)
    be1 = jnp.zeros((Cout,), jnp.float32)
    w2 = jax.random.normal(ks[3], (3, 3, Cout, Cout), jnp.float32) * 0.1  # HWIO
    b2 = jax.random.normal(ks[4], (Cout,), jnp.float32) * 0.1
    g2 = (1.0 + 0.1 * jax.random.normal(ks[5], (Cout,))).astype(jnp.float32)
    be2 = (0.1 * jax.random.normal(ks[6], (Cout,))).astype(jnp.float32)
    params = (w1, b1, g1, be1, w2, b2, g2, be2)

    y = down_forward(x, params)
    jax.block_until_ready(y)

    y_ref = reference(x, params)
    np.testing.assert_allclose(np.asarray(y), np.asarray(y_ref),
                               atol=1e-4, rtol=1e-4)
    print("KERNEL_OK")
</pallas_src>

<mosaic_0001>
module attributes {stable_mosaic.version = 11 : i64} {
  func.func @_pool_conv1_kernel(%arg0: i32, %arg1: memref<1x8x2x8x256xf32, #tpu.memory_space<vmem>>, %arg2: memref<1152x128xf32, #tpu.memory_space<vmem>>, %arg3: memref<1x64x128xf32, #tpu.memory_space<vmem>>, %arg4: memref<1x2x128xf32, #tpu.memory_space<vmem>>, %arg5: memref<10x10x128xf32, #tpu.memory_space<vmem>>, %arg6: memref<64x1152xf32, #tpu.memory_space<vmem>>) attributes {dimension_semantics = [#tpu.dimension_semantics<parallel>], iteration_bounds = array<i64: 2>, scalar_prefetch = 0 : i64, scratch_operands = 2 : i64, tpu.core_type = #tpu.core_type<tc>, window_params = [{transform_indices = @transform_0, window_bounds = array<i64: 1, 8, 2, 8, 256>}, {pipeline_mode = #tpu.pipeline_mode<synchronous>, transform_indices = @transform_1, window_bounds = array<i64: 1152, 128>}, {transform_indices = @transform_2, window_bounds = array<i64: 1, 64, 128>}, {transform_indices = @transform_3, window_bounds = array<i64: 1, 2, 128>}]} {
    %c0 = arith.constant 0 : index
    %c0_0 = arith.constant 0 : index
    %c0_1 = arith.constant 0 : index
    %c0_2 = arith.constant 0 : index
    %c0_3 = arith.constant 0 : index
    %0 = vector.load %arg1[%c0, %c0_0, %c0_1, %c0_2, %c0_3] : memref<1x8x2x8x256xf32, #tpu.memory_space<vmem>>, vector<1x8x2x8x256xf32>
    %1 = vector.shape_cast %0 : vector<1x8x2x8x256xf32> to vector<8x2x8x256xf32>
    %2 = vector.extract_strided_slice %1 {offsets = [0, 0, 0, 0], sizes = [8, 1, 8, 256], strides = [1, 1, 1, 1]} : vector<8x2x8x256xf32> to vector<8x1x8x256xf32>
    %3 = vector.shape_cast %2 : vector<8x1x8x256xf32> to vector<8x8x256xf32>
    %4 = vector.extract_strided_slice %1 {offsets = [0, 1, 0, 0], sizes = [8, 1, 8, 256], strides = [1, 1, 1, 1]} : vector<8x2x8x256xf32> to vector<8x1x8x256xf32>
    %5 = vector.shape_cast %4 : vector<8x1x8x256xf32> to vector<8x8x256xf32>
    %6 = arith.maximumf %3, %5 : vector<8x8x256xf32>
    %7 = vector.extract_strided_slice %6 {offsets = [0, 0, 0], sizes = [8, 8, 128], strides = [1, 1, 1]} : vector<8x8x256xf32> to vector<8x8x128xf32>
    %8 = vector.extract_strided_slice %6 {offsets = [0, 0, 128], sizes = [8, 8, 128], strides = [1, 1, 1]} : vector<8x8x256xf32> to vector<8x8x128xf32>
    %9 = arith.maximumf %7, %8 : vector<8x8x128xf32>
    %cst = arith.constant 0.000000e+00 : f32
    %10 = vector.broadcast %cst : f32 to vector<1x10x128xf32>
    %cst_4 = arith.constant 0.000000e+00 : f32
    %11 = vector.broadcast %cst_4 : f32 to vector<10x1x128xf32>
    %c0_5 = arith.constant 0 : index
    %c0_6 = arith.constant 0 : index
    %c0_7 = arith.constant 0 : index
    %12 = vector.load %arg5[%c0_5, %c0_6, %c0_7] : memref<10x10x128xf32, #tpu.memory_space<vmem>>, vector<1x10x128xf32>
    tpu.vector_store %arg5[%c0_5, %c0_6, %c0_7], %10 {strides = array<i32>} : memref<10x10x128xf32, #tpu.memory_space<vmem>>, vector<1x10x128xf32>,
    %c9 = arith.constant 9 : index
    %c0_8 = arith.constant 0 : index
    %c0_9 = arith.constant 0 : index
    %13 = vector.load %arg5[%c9, %c0_8, %c0_9] : memref<10x10x128xf32, #tpu.memory_space<vmem>>, vector<1x10x128xf32>
    tpu.vector_store %arg5[%c9, %c0_8, %c0_9], %10 {strides = array<i32>} : memref<10x10x128xf32, #tpu.memory_space<vmem>>, vector<1x10x128xf32>,
    %c0_10 = arith.constant 0 : index
    %c0_11 = arith.constant 0 : index
    %c0_12 = arith.constant 0 : index
    %14 = vector.load %arg5[%c0_10, %c0_11, %c0_12] : memref<10x10x128xf32, #tpu.memory_space<vmem>>, vector<10x1x128xf32>
    tpu.vector_store %arg5[%c0_10, %c0_11, %c0_12], %11 {strides = array<i32>} : memref<10x10x128xf32, #tpu.memory_space<vmem>>, vector<10x1x128xf32>,
    %c0_13 = arith.constant 0 : index
    %c9_14 = arith.constant 9 : index
    %c0_15 = arith.constant 0 : index
    %15 = vector.load %arg5[%c0_13, %c9_14, %c0_15] : memref<10x10x128xf32, #tpu.memory_space<vmem>>, vector<10x1x128xf32>
    tpu.vector_store %arg5[%c0_13, %c9_14, %c0_15], %11 {strides = array<i32>} : memref<10x10x128xf32, #tpu.memory_space<vmem>>, vector<10x1x128xf32>,
    %c1 = arith.constant 1 : index
    %c1_16 = arith.constant 1 : index
    %c0_17 = arith.constant 0 : index
    %16 = vector.load %arg5[%c1, %c1_16, %c0_17] : memref<10x10x128xf32, #tpu.memory_space<vmem>>, vector<8x8x128xf32>
    tpu.vector_store %arg5[%c1, %c1_16, %c0_17], %9 {strides = array<i32>} : memref<10x10x128xf32, #tpu.memory_space<vmem>>, vector<8x8x128xf32>,
    %c0_18 = arith.constant 0 : index
    %c0_19 = arith.constant 0 : index
    %c0_20 = arith.constant 0 : index
    %17 = vector.load %arg5[%c0_18, %c0_19, %c0_20] : memref<10x10x128xf32, #tpu.memory_space<vmem>>, vector<8x8x128xf32>
    %18 = vector.shape_cast %17 : vector<8x8x128xf32> to vector<64x128xf32>
    %c0_21 = arith.constant 0 : index
    %c0_22 = arith.constant 0 : index
    %19 = vector.load %arg6[%c0_21, %c0_22] : memref<64x1152xf32, #tpu.memory_space<vmem>>, vector<64x128xf32>
    tpu.vector_store %arg6[%c0_21, %c0_22], %18 {strides = array<i32>} : memref<64x1152xf32, #tpu.memory_space<vmem>>, vector<64x128xf32>,
    %c0_23 = arith.constant 0 : index
    %c1_24 = arith.constant 1 : index
    %c0_25 = arith.constant 0 : index
    %20 = vector.load %arg5[%c0_23, %c1_24, %c0_25] : memref<10x10x128xf32, #tpu.memory_space<vmem>>, vector<8x8x128xf32>
    %21 = vector.shape_cast %20 : vector<8x8x128xf32> to vector<64x128xf32>
    %c0_26 = arith.constant 0 : index
    %c128 = arith.constant 128 : index
    %22 = vector.load %arg6[%c0_26, %c128] : memref<64x1152xf32, #tpu.memory_space<vmem>>, vector<64x128xf32>
    tpu.vector_store %arg6[%c0_26, %c128], %21 {strides = array<i32>} : memref<64x1152xf32, #tpu.memory_space<vmem>>, vector<64x128xf32>,
    %c0_27 = arith.constant 0 : index
    %c2 = arith.constant 2 : index
    %c0_28 = arith.constant 0 : index
    %23 = vector.load %arg5[%c0_27, %c2, %c0_28] : memref<10x10x128xf32, #tpu.memory_space<vmem>>, vector<8x8x128xf32>
    %24 = vector.shape_cast %23 : vector<8x8x128xf32> to vector<64x128xf32>
    %c0_29 = arith.constant 0 : index
    %c256 = arith.constant 256 : index
    %25 = vector.load %arg6[%c0_29, %c256] : memref<64x1152xf32, #tpu.memory_space<vmem>>, vector<64x128xf32>
    tpu.vector_store %arg6[%c0_29, %c256], %24 {strides = array<i32>} : memref<64x1152xf32, #tpu.memory_space<vmem>>, vector<64x128xf32>,
    %c1_30 = arith.constant 1 : index
    %c0_31 = arith.constant 0 : index
    %c0_32 = arith.constant 0 : index
    %26 = vector.load %arg5[%c1_30, %c0_31, %c0_32] : memref<10x10x128xf32, #tpu.memory_space<vmem>>, vector<8x8x128xf32>
    %27 = vector.shape_cast %26 : vector<8x8x128xf32> to vector<64x128xf32>
    %c0_33 = arith.constant 0 : index
    %c384 = arith.constant 384 : index
    %28 = vector.load %arg6[%c0_33, %c384] : memref<64x1152xf32, #tpu.memory_space<vmem>>, vector<64x128xf32>
    tpu.vector_store %arg6[%c0_33, %c384], %27 {strides = array<i32>} : memref<64x1152xf32, #tpu.memory_space<vmem>>, vector<64x128xf32>,
    %c1_34 = arith.constant 1 : index
    %c1_35 = arith.constant 1 : index
    %c0_36 = arith.constant 0 : index
    %29 = vector.load %arg5[%c1_34, %c1_35, %c0_36] : memref<10x10x128xf32, #tpu.memory_space<vmem>>, vector<8x8x128xf32>
    %30 = vector.shape_cast %29 : vector<8x8x128xf32> to vector<64x128xf32>
    %c0_37 = arith.constant 0 : index
    %c512 = arith.constant 512 : index
    %31 = vector.load %arg6[%c0_37, %c512] : memref<64x1152xf32, #tpu.memory_space<vmem>>, vector<64x128xf32>
    tpu.vector_store %arg6[%c0_37, %c512], %30 {strides = array<i32>} : memref<64x1152xf32, #tpu.memory_space<vmem>>, vector<64x128xf32>,
    %c1_38 = arith.constant 1 : index
    %c2_39 = arith.constant 2 : index
    %c0_40 = arith.constant 0 : index
    %32 = vector.load %arg5[%c1_38, %c2_39, %c0_40] : memref<10x10x128xf32, #tpu.memory_space<vmem>>, vector<8x8x128xf32>
    %33 = vector.shape_cast %32 : vector<8x8x128xf32> to vector<64x128xf32>
    %c0_41 = arith.constant 0 : index
    %c640 = arith.constant 640 : index
    %34 = vector.load %arg6[%c0_41, %c640] : memref<64x1152xf32, #tpu.memory_space<vmem>>, vector<64x128xf32>
    tpu.vector_store %arg6[%c0_41, %c640], %33 {strides = array<i32>} : memref<64x1152xf32, #tpu.memory_space<vmem>>, vector<64x128xf32>,
    %c2_42 = arith.constant 2 : index
    %c0_43 = arith.constant 0 : index
    %c0_44 = arith.constant 0 : index
    %35 = vector.load %arg5[%c2_42, %c0_43, %c0_44] : memref<10x10x128xf32, #tpu.memory_space<vmem>>, vector<8x8x128xf32>
    %36 = vector.shape_cast %35 : vector<8x8x128xf32> to vector<64x128xf32>
    %c0_45 = arith.constant 0 : index
    %c768 = arith.constant 768 : index
    %37 = vector.load %arg6[%c0_45, %c768] : memref<64x1152xf32, #tpu.memory_space<vmem>>, vector<64x128xf32>
    tpu.vector_store %arg6[%c0_45, %c768], %36 {strides = array<i32>} : memref<64x1152xf32, #tpu.memory_space<vmem>>, vector<64x128xf32>,
    %c2_46 = arith.constant 2 : index
    %c1_47 = arith.constant 1 : index
    %c0_48 = arith.constant 0 : index
    %38 = vector.load %arg5[%c2_46, %c1_47, %c0_48] : memref<10x10x128xf32, #tpu.memory_space<vmem>>, vector<8x8x128xf32>
    %39 = vector.shape_cast %38 : vector<8x8x128xf32> to vector<64x128xf32>
    %c0_49 = arith.constant 0 : index
    %c896 = arith.constant 896 : index
    %40 = vector.load %arg6[%c0_49, %c896] : memref<64x1152xf32, #tpu.memory_space<vmem>>, vector<64x128xf32>
    tpu.vector_store %arg6[%c0_49, %c896], %39 {strides = array<i32>} : memref<64x1152xf32, #tpu.memory_space<vmem>>, vector<64x128xf32>,
    %c2_50 = arith.constant 2 : index
    %c2_51 = arith.constant 2 : index
    %c0_52 = arith.constant 0 : index
    %41 = vector.load %arg5[%c2_50, %c2_51, %c0_52] : memref<10x10x128xf32, #tpu.memory_space<vmem>>, vector<8x8x128xf32>
    %42 = vector.shape_cast %41 : vector<8x8x128xf32> to vector<64x128xf32>
    %c0_53 = arith.constant 0 : index
    %c1024 = arith.constant 1024 : index
    %43 = vector.load %arg6[%c0_53, %c1024] : memref<64x1152xf32, #tpu.memory_space<vmem>>, vector<64x128xf32>
    tpu.vector_store %arg6[%c0_53, %c1024], %42 {strides = array<i32>} : memref<64x1152xf32, #tpu.memory_space<vmem>>, vector<64x128xf32>,
    %c0_54 = arith.constant 0 : index
    %c0_55 = arith.constant 0 : index
    %44 = vector.load %arg6[%c0_54, %c0_55] : memref<64x1152xf32, #tpu.memory_space<vmem>>, vector<64x1152xf32>
    %c0_56 = arith.constant 0 : index
    %c0_57 = arith.constant 0 : index
    %45 = vector.load %arg2[%c0_56, %c0_57] : memref<1152x128xf32, #tpu.memory_space<vmem>>, vector<1152x128xf32>
    %cst_58 = arith.constant dense<0.000000e+00> : vector<64x128xf32>
    %46 = tpu.matmul %44, %45, %cst_58 {dimension_numbers = #tpu.dot_dimension_numbers<[1], [0], [0], [1], [0, 0, 1, 1], [], []>} : vector<64x1152xf32>, vector<1152x128xf32>, vector<64x128xf32> -> vector<64x128xf32>
    %c0_59 = arith.constant 0 : index
    %c0_60 = arith.constant 0 : index
    %c0_61 = arith.constant 0 : index
    %47 = vector.load %arg3[%c0_59, %c0_60, %c0_61] : memref<1x64x128xf32, #tpu.memory_space<vmem>>, vector<1x64x128xf32>
    %48 = vector.shape_cast %47 : vector<1x64x128xf32> to vector<64x128xf32>
    %49 = vector.shape_cast %46 : vector<64x128xf32> to vector<1x64x128xf32>
    tpu.vector_store %arg3[%c0_59, %c0_60, %c0_61], %49 {strides = array<i32>} : memref<1x64x128xf32, #tpu.memory_space<vmem>>, vector<1x64x128xf32>,
    %cst_62 = arith.constant dense<0.000000e+00> : vector<128xf32>
    %50 = vector.multi_reduction <add>, %46, %cst_62 [0] : vector<64x128xf32> to vector<128xf32>
    %51 = vector.shape_cast %50 : vector<128xf32> to vector<1x128xf32>
    %c0_63 = arith.constant 0 : index
    %c0_64 = arith.constant 0 : index
    %c0_65 = arith.constant 0 : index
    %52 = vector.load %arg4[%c0_63, %c0_64, %c0_65] : memref<1x2x128xf32, #tpu.memory_space<vmem>>, vector<1x1x128xf32>
    %53 = vector.shape_cast %52 : vector<1x1x128xf32> to vector<1x128xf32>
    %54 = vector.shape_cast %51 : vector<1x128xf32> to vector<1x1x128xf32>
    tpu.vector_store %arg4[%c0_63, %c0_64, %c0_65], %54 {strides = array<i32>} : memref<1x2x128xf32, #tpu.memory_space<vmem>>, vector<1x1x128xf32>,
    %55 = arith.mulf %46, %46 : vector<64x128xf32>
    %cst_66 = arith.constant dense<0.000000e+00> : vector<128xf32>
    %56 = vector.multi_reduction <add>, %55, %cst_66 [0] : vector<64x128xf32> to vector<128xf32>
    %57 = vector.shape_cast %56 : vector<128xf32> to vector<1x128xf32>
    %c0_67 = arith.constant 0 : index
    %c1_68 = arith.constant 1 : index
    %c0_69 = arith.constant 0 : index
    %58 = vector.load %arg4[%c0_67, %c1_68, %c0_69] : memref<1x2x128xf32, #tpu.memory_space<vmem>>, vector<1x1x128xf32>
    %59 = vector.shape_cast %58 : vector<1x1x128xf32> to vector<1x128xf32>
    %60 = vector.shape_cast %57 : vector<1x128xf32> to vector<1x1x128xf32>
    tpu.vector_store %arg4[%c0_67, %c1_68, %c0_69], %60 {strides = array<i32>} : memref<1x2x128xf32, #tpu.memory_space<vmem>>, vector<1x1x128xf32>,
    return
  }
  func.func @transform_0(%arg0: i32) -> (i32, i32, i32, i32, i32) {
    %c0_i32 = arith.constant 0 : i32
    %c0_i32_0 = arith.constant 0 : i32
    %c0_i32_1 = arith.constant 0 : i32
    %c0_i32_2 = arith.constant 0 : i32
    %c0_i32_3 = arith.constant 0 : i32
    return %arg0, %c0_i32, %c0_i32_0, %c0_i32_1, %c0_i32_2 : i32, i32, i32, i32, i32
  }
  func.func @transform_1(%arg0: i32) -> (i32, i32) {
    %c0_i32 = arith.constant 0 : i32
    %c0_i32_0 = arith.constant 0 : i32
    %c0_i32_1 = arith.constant 0 : i32
    return %c0_i32, %c0_i32_0 : i32, i32
  }
  func.func @transform_2(%arg0: i32) -> (i32, i32, i32) {
    %c0_i32 = arith.constant 0 : i32
    %c0_i32_0 = arith.constant 0 : i32
    %c0_i32_1 = arith.constant 0 : i32
    return %arg0, %c0_i32, %c0_i32_0 : i32, i32, i32
  }
  func.func @transform_3(%arg0: i32) -> (i32, i32, i32) {
    %c0_i32 = arith.constant 0 : i32
    %c0_i32_0 = arith.constant 0 : i32
    %c0_i32_1 = arith.constant 0 : i32
    return %arg0, %c0_i32, %c0_i32_0 : i32, i32, i32
  }
}

</mosaic_0001>

<bundles_post_ra>
// kernel: tpu_custom_call.1
= control target key start
LH: loop header
LB: loop body
LE: loop exit
PB: predicated region body
PF: predicated region fallthrough
CT: control target
= control target key end

     0   :  { %9 = vsyncpa [#allocation5], 0  ;;  %s2525_s0 = inlined_call_operand.hbm [shape: f32[2,8,2,8,256], index: 0, kind: input, shape index: {}]   ;;  %s2526_s1 = inlined_call_operand.hbm [shape: f32[1152,128], index: 1, kind: input, shape index: {}]   ;;  %s2527_s2 = inlined_call_operand.hbm [shape: f32[2,64,128], index: 2, kind: output, shape index: {0}]   ;;  %s2528_s3 = inlined_call_operand.hbm [shape: f32[2,2,128], index: 3, kind: output, shape index: {1}]  }
   0x1   :  { %11 = vsyncpa [#allocation5 + $0x1], 0 }
   0x2   :  { %12 = vsyncpa [#allocation8], 0 }
   0x3   :  { %13 = vsyncpa [#allocation6], 0 }
   0x4   :  { %15 = vsyncpa [#allocation6 + $0x1], 0 }
   0x5   :  { %16 = vsyncpa [#allocation11], 0 }
   0x6   :  { %18 = vsyncpa [#allocation11 + $0x1], 0  ;;  %s2133_s12 = smov 0   ;;  %s2135_s13 = smov 0  }
   0x7   :  { %s2137_s14 = smov 0   ;;  %s2139_s15 = smov 0  }
   0x8 LB: > { %s2154_s16 = sadd.s32 4294967295, %s2100_s15   ;;  %s1382_s17 = sadd.s32 4294967294, %s2100_s15   ;;  %s2100_s15 = sphi %s2139_s15, %s2548_s15   ;;  %s2096_s14 = sphi %s2137_s14, %s2547_s14   ;;  %s2092_s13 = sphi %s2135_s13, %s2546_s13   ;;  %s2088_s12 = sphi %s2133_s12, %s2545_s12  }
   0x9   : > { %p44_p0 = scmp.ne.s32.totalorder %s2092_s13, %s2088_s12  ;;  %p2529_p1 = scmp.eq.s32.totalorder %s2154_s16, 0 }
   0xa   : > { %p95_p3 = scmp.eq.s32.totalorder %s1382_s17, 1  ;;  %p1383_p5 = scmp.ge.s32.totalorder %s2100_s15, 1 }
   0xb   : > { %p2163_p4 = por %p2529_p1, %p44_p0  ;;  %p128_p7 = scmp.lt.s32.totalorder %s2100_s15, 3 }
   0xc   : > { %p2168_p6 = por %p95_p3, %p44_p0  ;;  %s2102_s21 = smov [#allocation7]  }
   0xd   : > { %s2532_s18 = scalar_select %p2163_p4, 1, 0 }
   0xe   : > { %s2533_s19 = scalar_select %p2168_p6, 1, 0 }
   0xf   : > { %p2173_p8 = pnand %p1383_p5, %p128_p7  ;;  %s140_s22 = sshll.u32 %s2102_s21, 4  ;;  %s2177_s22 = int_to_ptr.vmem [resolvable:$true] %s140_s22 }
  0x10   : > { %s2189_s24 = sadd.s32 1, %s2100_s15   ;;  %s31_s25 = sadd.s32 1, %s2096_s14 }
  0x11   : > { %s2534_s20 = scalar_select %p2173_p8, 1, 0 }
  0x12   : > { %p1881_p9 = pneg %p2173_p8  ;;  %s28_s26 = ssub.s32 %s2100_s15, %s2189_s24 }
  0x13   : > { %s1940_s29 = scalar_lea.hbm %s2526_s1, 18432 }
  0x14   : > { %p2184_p11 = pnand %p1881_p9, %p2529_p1  ;;  %p1941_p12 = scmp.ne.s32.totalorder %s2526_s1, %s1940_s29 }
  0x15   : > { %p1947_p5 = scmp.lt.u32.totalorder %s1940_s29, %s2526_s1 }
  0x16   : > { %p1942_p13 = pneg %p2184_p11 }
  0x18   : > { %p1943_p0 = pnand %p1942_p13, %p1941_p12 }
  0x1a   : > { %p1944_p3 = pneg %p1943_p0 }
  0x1c   : > { %p1949_p7 = pnand %p1947_p5, %p1944_p3 }
  0x1e   : > { %1952 = shalt.err (!%p1949_p7)
}
  0x1f   : > { %s1953_s7 = scalar_lea.vmem %s2177_s22, 18432  ;;  %p1961_p2 = scmp.lt.s32.totalorder %s2177_s22, %s2177_s22 }
  0x20   : > { %p1954_p9 = scmp.ne.s32.totalorder %s2177_s22, %s1953_s7  ;;  %p1962_p6 = scmp.lt.s32.totalorder %s1953_s7, %s1953_s7 }
  0x22   : > { %p1956_p10 = pnand %p1954_p9, %p1942_p13  ;;  %p1963_p4 = por %p1962_p6, %p1961_p2 }
  0x24   : > { %p1957_p1 = pneg %p1956_p10 }
  0x26   : > { %p1964_p8 = pnand %p1963_p4, %p1957_p1 }
  0x28   : > { %1967 = shalt.err (!%p1964_p8)
}
  0x29   : > { %s2103_s8 = smov 128   ;;  %s2104_s9 = smov 8  }
  0x2a   : > { %1884 = dma.hbm_to_vmem [thread:$0]  (!%p2184_p11), %s2526_s1, 18432, %s2177_s22, [#allocation8], %s2103_s8, %s2103_s8, %s2104_s9  }
  0x2b   : > { %p29_p2 = scmp.eq.s32.totalorder %s28_s26, 0  ;;  %p38_p1 = scmp.ne.s32.totalorder %s2096_s14, %s2092_s13 }
  0x2c   : > { %p39_p4 = scmp.eq.s32.totalorder %s2100_s15, 0  ;;  %p1897_p6 = scmp.lt.s32.totalorder %s2100_s15, 2 }
  0x2d   : > { %s2220_s17 = scalar_select %p29_p2, %s2096_s14, %s31_s25  }
  0x2e   : > { %p40_p8 = por %p39_p4, %p38_p1  ;;  %p2536_p10 = scmp.eq.s32.totalorder %s2154_s16, 1 }
  0x2f   : > { %s154_s27 = sand.u32 1, %s2096_s14   ;;  %s1401_s28 = sshll.u32 %s2100_s15, 12 }
  0x30   : > { %p2224_p12 = por %p2536_p10, %p38_p1  ;;  %s1386_s29 = sshll.u32 %s154_s27, 8 }
  0x31   : > { %s2233_s4 = scalar_lea.hbm %s2525_s0, %s1401_s28  ;;  %s158_s22 = scalar_lea.vmem [#allocation4], %s1386_s29 }
  0x32   : > { %s165_s25 = sshll.u32 %s158_s22, 4  ;;  %p2235_p11 = pnand %p1897_p6, %p40_p8  ;;  %s2239_s25 = int_to_ptr.vmem [resolvable:$true] %s165_s25 }
  0x33   : > { %s2241_s5 = scalar_lea.sflag [#allocation5], %s154_s27  ;;  %s1968_s6 = scalar_lea.hbm %s2233_s4, 4096 }
  0x34   : > { %p1969_p13 = scmp.ne.s32.totalorder %s2233_s4, %s1968_s6  ;;  %p1970_p0 = pneg %p2235_p11 }
  0x35   : > { %s1973_s9 = scalar_lea.hbm %s2525_s0, 8192  ;;  %p1974_p7 = scmp.lt.u32.totalorder %s2233_s4, %s2525_s0 }
  0x36   : > { %p1971_p3 = pnand %p1970_p0, %p1969_p13  ;;  %p1975_p9 = scmp.lt.u32.totalorder %s1973_s9, %s1968_s6 }
  0x37   : > { %p1977_p1 = scmp.lt.u32.totalorder %s1968_s6, %s2233_s4 }
  0x38   : > { %p1972_p5 = pneg %p1971_p3  ;;  %p1976_p2 = por %p1975_p9, %p1974_p7 }
  0x3a   : > { %p1978_p4 = por %p1977_p1, %p1976_p2 }
  0x3c   : > { %p1979_p6 = pnand %p1978_p4, %p1972_p5 }
  0x3e   : > { %1982 = shalt.err (!%p1979_p6)
}
  0x3f   : > { %s1983_s27 = scalar_lea.vmem %s2239_s25, 4096  ;;  %s2105_s28 = smov [#allocation4]  }
  0x40   : > { %p1984_p8 = scmp.ne.s32.totalorder %s2239_s25, %s1983_s27  ;;  %s1988_s29 = sshll.u32 %s2105_s28, 4  ;;  %s1989_s29 = int_to_ptr.vmem [resolvable:$false] %s1988_s29 }
  0x41   : > { %s1990_s23 = scalar_lea.vmem %s1989_s29, 8192  ;;  %p1991_p3 = scmp.lt.s32.totalorder %s2239_s25, %s1989_s29 }
  0x42   : > { %p1986_p10 = pnand %p1984_p8, %p1970_p0  ;;  %p1992_p7 = scmp.lt.s32.totalorder %s1990_s23, %s1983_s27 }
  0x44   : > { %p1987_p13 = pneg %p1986_p10  ;;  %p1993_p9 = por %p1992_p7, %p1991_p3 }
  0x46   : > { %p1994_p2 = pnand %p1993_p9, %p1987_p13 }
  0x48   : > { %1997 = shalt.err (!%p1994_p2)
}
  0x49   : > { %s2106_s30 = smov 256   ;;  %s2107_s22 = smov 16  }
  0x4a   : > { %1888 = dma.hbm_to_vmem [thread:$0]  (!%p2235_p11), %s2233_s4, 4096, %s2239_s25, %s2241_s5, %s2106_s30, %s2106_s30, %s2107_s22  }
  0x4b   : > { %p2539_p0 = scmp.ne.s32.totalorder %s2534_s20, 0 }
  0x4c   : > { %s2272_s6 = sand.u32 (!%p2539_p0), 1, %s2092_s13   ;;  %p2540_p5 = scmp.ne.s32.totalorder (!%p2539_p0), %s2532_s18, 0 }
  0x4d   : > { %177 = sbr.rel (%p2539_p0) target bundleno = 460 (0x1cc), region = 28  ;;  %s1390_s7 = sshll.u32 (!%p2539_p0), %s2272_s6, 8 }
  0x4e   : > { %s180_s8 = scalar_lea.sflag (!%p2539_p0), [#allocation5], %s2272_s6  ;;  %s2276_s9 = scalar_lea.vmem (!%p2539_p0), [#allocation4], %s1390_s7 }
  0x54   : > { %2071 = dma.done.wait (%p2540_p5), %s180_s8, 4096  }
  0x55   : > { %2073 = vsyncadd (%p2540_p5), %s180_s8, 4294963200  ;;  %p2541_p11 = scmp.eq.s32.totalorder %s2154_s16, 0 }
  0x57   : > { %2075 = dma.done.wait (%p2541_p11), [#allocation8], 18432   ;;  %p2542_p1 = pmov %p2541_p11 }
  0x58   : > { %v2108_v0 = vmov 0.0   ;;  %v538_v1 = vld [vmem:[#allocation7 + $0x80] sm:$0xff]  ;;  %v539_v2 = vld [vmem:[#allocation7 + $0x88] sm:$0xff]  ;;  %v540_v12 = vld [vmem:[#allocation7 + $0x90] sm:$0xff]  ;;  %s1392_s18 = sshll.u32 %s2272_s6, 6  ;;  %s1402_s25 = sshll.u32 %s2154_s16, 10 }
  0x59   : > { %2077 = vsyncadd (%p2542_p1), [#allocation8], 4294948864  ;;  %271 = vst [vmem:[#allocation2] sm:$0xff] %v2108_v0  ;;  %v570_v3 = vld [vmem:[#allocation7 + $0x180] sm:$0xff]  ;;  %v1695_v4 = vpack.c.bf16 %v539_v2, %v538_v1  ;;  %v571_v5 = vld [vmem:[#allocation7 + $0x188] sm:$0xff]  ;;  %s2433_s20 = scalar_lea.vmem [#allocation9], %s1392_s18  ;;  %s2448_s10 = scalar_lea.hbm %s2527_s2, %s1402_s25 }
  0x5a   : > { %272 = vst [vmem:[#allocation2 + $0x8] sm:$0x3] %v2108_v0  ;;  %274 = vst [vmem:[#allocation2 + $0x90] sm:$0xff] %v2108_v0  ;;  %v522_v6 = vld [vmem:[#allocation7] sm:$0xff]  ;;  %v523_v7 = vld [vmem:[#allocation7 + $0x8] sm:$0xff]  ;;  %v1727_v8 = vpack.c.bf16 %v571_v5, %v570_v3  ;;  %s1254_s4 = sshll.u32 %s2433_s20, 4  ;;  %s2442_s4 = int_to_ptr.vmem [resolvable:$true] %s1254_s4 }
  0x5b   : > { %275 = vst [vmem:[#allocation2 + $0x98] sm:$0x3] %v2108_v0  ;;  %277 = vst [vmem:[#allocation2 + $0x10] sm:$0x1] %v2108_v0  ;;  %v1697_v9 = vpack.c.bf16 %v523_v7, %v522_v6  ;;  %v554_v10 = vld [vmem:[#allocation7 + $0x100] sm:$0xff]  ;;  %v555_v11 = vld [vmem:[#allocation7 + $0x108] sm:$0xff]  ;;  %1696 = vmatprep.subr.bf16.mxu0 %v1695_v4 }
  0x5c   : > { %278 = vst [vmem:[#allocation2 + $0x20] sm:$0x1] %v2108_v0  ;;  %279 = vst [vmem:[#allocation2 + $0x30] sm:$0x1] %v2108_v0  ;;  %v1729_v13 = vpack.c.bf16 %v555_v11, %v554_v10  ;;  %v541_v14 = vld [vmem:[#allocation7 + $0x98] sm:$0xff]  ;;  %v572_v15 = vld [vmem:[#allocation7 + $0x190] sm:$0xff]  ;;  %1728 = vmatprep.subr.bf16.mxu1 %v1727_v8 }
  0x5d   : > { %280 = vst [vmem:[#allocation2 + $0x40] sm:$0x1] %v2108_v0  ;;  %281 = vst [vmem:[#allocation2 + $0x50] sm:$0x1] %v2108_v0  ;;  %v573_v16 = vld [vmem:[#allocation7 + $0x198] sm:$0xff]  ;;  %1698 = vmatpush3.bf16.msra.mxu0 %v1697_v9  ;;  %v1699_v17 = vpack.c.bf16 %v541_v14, %v540_v12  ;;  %v524_v19 = vld [vmem:[#allocation7 + $0x10] sm:$0xff] }
  0x5e   : > { %282 = vst [vmem:[#allocation2 + $0x60] sm:$0x1] %v2108_v0  ;;  %283 = vst [vmem:[#allocation2 + $0x70] sm:$0x1] %v2108_v0  ;;  %v1731_v18 = vpack.c.bf16 %v573_v16, %v572_v15  ;;  %v525_v20 = vld [vmem:[#allocation7 + $0x18] sm:$0xff]  ;;  %v556_v21 = vld [vmem:[#allocation7 + $0x110] sm:$0xff]  ;;  %1730 = vmatpush3.bf16.msra.mxu1 %v1729_v13 }
  0x5f   : > { %284 = vst [vmem:[#allocation2 + $0x80] sm:$0x1] %v2108_v0  ;;  %287 = vst [vmem:[#allocation2 + $0x19] sm:$0x1] %v2108_v0  ;;  %v1701_v22 = vpack.c.bf16 %v525_v20, %v524_v19  ;;  %v557_v23 = vld [vmem:[#allocation7 + $0x118] sm:$0xff]  ;;  %v542_v24 = vld [vmem:[#allocation7 + $0xa0] sm:$0xff]  ;;  %1700 = vmatprep.subr.bf16.mxu0 %v1699_v17 }
  0x60   : > { %288 = vst [vmem:[#allocation2 + $0x29] sm:$0x1] %v2108_v0  ;;  %289 = vst [vmem:[#allocation2 + $0x39] sm:$0x1] %v2108_v0  ;;  %v543_v25 = vld [vmem:[#allocation7 + $0xa8] sm:$0xff]  ;;  %1732 = vmatprep.subr.bf16.mxu1 %v1731_v18  ;;  %v1733_v26 = vpack.c.bf16 %v557_v23, %v556_v21  ;;  %v574_v28 = vld [vmem:[#allocation7 + $0x1a0] sm:$0xff] }
  0x61   : > { %290 = vst [vmem:[#allocation2 + $0x49] sm:$0x1] %v2108_v0  ;;  %291 = vst [vmem:[#allocation2 + $0x59] sm:$0x1] %v2108_v0  ;;  %v1703_v27 = vpack.c.bf16 %v543_v25, %v542_v24  ;;  %v575_v29 = vld [vmem:[#allocation7 + $0x1a8] sm:$0xff]  ;;  %v526_v30 = vld [vmem:[#allocation7 + $0x20] sm:$0xff]  ;;  %1702 = vmatpush3.bf16.msra.mxu0 %v1701_v22 }
  0x62   : > { %292 = vst [vmem:[#allocation2 + $0x69] sm:$0x1] %v2108_v0  ;;  %293 = vst [vmem:[#allocation2 + $0x79] sm:$0x1] %v2108_v0  ;;  %v1735_v31 = vpack.c.bf16 %v575_v29, %v574_v28  ;;  %v527_v32 = vld [vmem:[#allocation7 + $0x28] sm:$0xff]  ;;  %v558_v33 = vld [vmem:[#allocation7 + $0x120] sm:$0xff]  ;;  %1734 = vmatpush3.bf16.msra.mxu1 %v1733_v26 }
  0x63   : > { %294 = vst [vmem:[#allocation2 + $0x89] sm:$0x1] %v2108_v0  ;;  %276 = vst [vmem:[#allocation2] sm:$0x1] %v2108_v0  ;;  %v559_v34 = vld [vmem:[#allocation7 + $0x128] sm:$0xff]  ;;  %v1705_v35 = vpack.c.bf16 %v527_v32, %v526_v30  ;;  %v544_v36 = vld [vmem:[#allocation7 + $0xb0] sm:$0xff]  ;;  %1704 = vmatprep.subr.bf16.mxu0 %v1703_v27 }
  0x64   : > { %286 = vst [vmem:[#allocation2 + $0x9] sm:$0x1] %v2108_v0  ;;  %285 = vst [vmem:[#allocation2 + $0x90] sm:$0x1] %v2108_v0  ;;  %v545_v37 = vld [vmem:[#allocation7 + $0xb8] sm:$0xff]  ;;  %v576_v38 = vld [vmem:[#allocation7 + $0x1b0] sm:$0xff]  ;;  %v1737_v39 = vpack.c.bf16 %v559_v34, %v558_v33  ;;  %1736 = vmatprep.subr.bf16.mxu1 %v1735_v31 }
  0x65   : > { %295 = vst [vmem:[#allocation2 + $0x99] sm:$0x1] %v2108_v0  ;;  %v1707_v40 = vpack.c.bf16 %v545_v37, %v544_v36  ;;  %v577_v41 = vld [vmem:[#allocation7 + $0x1b8] sm:$0xff]  ;;  %v528_v42 = vld [vmem:[#allocation7 + $0x30] sm:$0xff]  ;;  %v546_v47 = vld [vmem:[#allocation7 + $0xc0] sm:$0xff]  ;;  %1706 = vmatpush3.bf16.msra.mxu0 %v1705_v35  ;;  %s1236_s11 = scalar_lea.sflag [#allocation6], %s2272_s6 }
  0x66   : > { %v529_v43 = vld [vmem:[#allocation7 + $0x38] sm:$0xff]  ;;  %v1739_v44 = vpack.c.bf16 %v577_v41, %v576_v38  ;;  %v560_v45 = vld [vmem:[#allocation7 + $0x130] sm:$0xff]  ;;  %v547_v48 = vld [vmem:[#allocation7 + $0xc8] sm:$0xff]  ;;  %1738 = vmatpush3.bf16.msra.mxu1 %v1737_v39  ;;  %s1998_s27 = scalar_lea.vmem %s2442_s4, 1024  ;;  %s2109_s28 = smov [#allocation9]  }
  0x67   : > { %v561_v46 = vld [vmem:[#allocation7 + $0x138] sm:$0xff]  ;;  %v578_v49 = vld [vmem:[#allocation7 + $0x1c0] sm:$0xff]  ;;  %v579_v50 = vld [vmem:[#allocation7 + $0x1c8] sm:$0xff]  ;;  %v1709_v51 = vpack.c.bf16 %v529_v43, %v528_v42  ;;  %1708 = vmatprep.subr.bf16.mxu0 %v1707_v40  ;;  %v1711_v53 = vpack.c.bf16 %v547_v48, %v546_v47  ;;  %p1999_p4 = scmp.ne.s32.totalorder %s2442_s4, %s1998_s27  ;;  %s2002_s29 = sshll.u32 %s2109_s28, 4  ;;  %s2003_s29 = int_to_ptr.vmem [resolvable:$false] %s2002_s29 }
  0x68   : > { %v1741_v52 = vpack.c.bf16 %v561_v46, %v560_v45  ;;  %v530_v54 = vld [vmem:[#allocation7 + $0x40] sm:$0xff]  ;;  %v531_v55 = vld [vmem:[#allocation7 + $0x48] sm:$0xff]  ;;  %1740 = vmatprep.subr.bf16.mxu1 %v1739_v44  ;;  %v1743_v57 = vpack.c.bf16 %v579_v50, %v578_v49  ;;  %v548_v59 = vld [vmem:[#allocation7 + $0xd0] sm:$0xff]  ;;  %s2004_s23 = scalar_lea.vmem %s2003_s29, 2048  ;;  %p2005_p10 = scmp.lt.s32.totalorder %s2442_s4, %s2003_s29 }
  0x69   : > { %v562_v56 = vld [vmem:[#allocation7 + $0x140] sm:$0xff]  ;;  %v563_v58 = vld [vmem:[#allocation7 + $0x148] sm:$0xff]  ;;  %v549_v60 = vld [vmem:[#allocation7 + $0xd8] sm:$0xff]  ;;  %1710 = vmatpush3.bf16.msra.mxu0 %v1709_v51  ;;  %v1713_v63 = vpack.c.bf16 %v531_v55, %v530_v54  ;;  %p2000_p6 = pnand %p1999_p4, %p2224_p12  ;;  %p2006_p13 = scmp.lt.s32.totalorder %s2004_s23, %s1998_s27 }
  0x6a   : > { %v580_v61 = vld [vmem:[#allocation7 + $0x1d0] sm:$0xff]  ;;  %v581_v62 = vld [vmem:[#allocation7 + $0x1d8] sm:$0xff]  ;;  %1742 = vmatpush3.bf16.msra.mxu1 %v1741_v52  ;;  %1712 = vmatprep.subr.bf16.mxu0 %v1711_v53  ;;  %v1745_v1 = vpack.c.bf16 %v563_v58, %v562_v56  ;;  %v1715_v2 = vpack.c.bf16 %v549_v60, %v548_v59  ;;  %v550_v7 = vld [vmem:[#allocation7 + $0xe0] sm:$0xff] }
  0x6b   : > { %v532_v0 = vld [vmem:[#allocation7 + $0x50] sm:$0xff]  ;;  %v533_v3 = vld [vmem:[#allocation7 + $0x58] sm:$0xff]  ;;  %1744 = vmatprep.subr.bf16.mxu1 %v1743_v57  ;;  %v1747_v6 = vpack.c.bf16 %v581_v62, %v580_v61  ;;  %v551_v8 = vld [vmem:[#allocation7 + $0xe8] sm:$0xff]  ;;  %p2001_p8 = pneg %p2000_p6  ;;  %p2007_p3 = por %p2006_p13, %p2005_p10 }
  0x6c   : > { %v564_v4 = vld [vmem:[#allocation7 + $0x150] sm:$0xff]  ;;  %v565_v5 = vld [vmem:[#allocation7 + $0x158] sm:$0xff]  ;;  %v582_v9 = vld [vmem:[#allocation7 + $0x1e0] sm:$0xff]  ;;  %v1717_v13 = vpack.c.bf16 %v533_v3, %v532_v0  ;;  %v1719_v18 = vpack.c.bf16 %v551_v8, %v550_v7 }
  0x6d   : > { %v583_v10 = vld [vmem:[#allocation7 + $0x1e8] sm:$0xff]  ;;  %v534_v11 = vld [vmem:[#allocation7 + $0x60] sm:$0xff]  ;;  %1714 = vmatpush3.bf16.msra.mxu0 %v1713_v63  ;;  %v552_v16 = vld [vmem:[#allocation7 + $0xf0] sm:$0xff]  ;;  %v1749_v17 = vpack.c.bf16 %v565_v5, %v564_v4  ;;  %p2008_p7 = pnand %p2007_p3, %p2001_p8 }
  0x6e   : > { %v535_v12 = vld [vmem:[#allocation7 + $0x68] sm:$0xff]  ;;  %v566_v14 = vld [vmem:[#allocation7 + $0x160] sm:$0xff]  ;;  %1746 = vmatpush3.bf16.msra.mxu1 %v1745_v1  ;;  %1716 = vmatprep.subr.bf16.mxu0 %v1715_v2  ;;  %v553_v19 = vld [vmem:[#allocation7 + $0xf8] sm:$0xff]  ;;  %v1751_v22 = vpack.c.bf16 %v583_v10, %v582_v9 }
  0x6f   : > { %v567_v15 = vld [vmem:[#allocation7 + $0x168] sm:$0xff]  ;;  %v215_v21 = vld [vmem:[%s2276_s9] sm:$0xff]  ;;  %1748 = vmatprep.subr.bf16.mxu1 %v1747_v6  ;;  %v217_v24 = vld [vmem:[%s2276_s9 + $0x10] sm:$0xff]  ;;  %v1721_v30 = vpack.c.bf16 %v535_v12, %v534_v11  ;;  %v1723_v35 = vpack.c.bf16 %v553_v19, %v552_v16 }
  0x70   : > { %v321_v20 = vld [vmem:[#allocation2 + $0x1] sm:$0xff]  ;;  %v218_v25 = vld [vmem:[%s2276_s9 + $0x18] sm:$0xff]  ;;  %v584_v26 = vld [vmem:[#allocation7 + $0x1f0] sm:$0xff]  ;;  %v247_v28 = vmax.f32 %v215_v21, %v217_v24  ;;  %v1753_v34 = vpack.c.bf16 %v567_v15, %v566_v14 }
  0x71   : > { %730 = vmatprep.mubr.f32.mxu0 %v321_v20  ;;  %v216_v23 = vld [vmem:[%s2276_s9 + $0x8] sm:$0xff]  ;;  %v585_v27 = vld [vmem:[#allocation7 + $0x1f8] sm:$0xff]  ;;  %1718 = vmatpush3.bf16.msra.mxu0 %v1717_v13  ;;  %v536_v31 = vld [vmem:[#allocation7 + $0x70] sm:$0xff] }
  0x72   : > { %v248_v29 = vmax.f32 %v216_v23, %v218_v25  ;;  %v537_v32 = vld [vmem:[#allocation7 + $0x78] sm:$0xff]  ;;  %v568_v33 = vld [vmem:[#allocation7 + $0x170] sm:$0xff]  ;;  %1750 = vmatpush3.bf16.msra.mxu1 %v1749_v17  ;;  %1720 = vmatprep.subr.bf16.mxu0 %v1719_v18  ;;  %v602_v38 = vld [vmem:[#allocation7 + $0x280] sm:$0xff]  ;;  %v1755_v40 = vpack.c.bf16 %v585_v27, %v584_v26 }
  0x73   : > { %v569_v36 = vld [vmem:[#allocation7 + $0x178] sm:$0xff]  ;;  %v603_v39 = vld [vmem:[#allocation7 + $0x288] sm:$0xff]  ;;  %1752 = vmatprep.subr.bf16.mxu1 %v1751_v22  ;;  %v634_v41 = vld [vmem:[#allocation7 + $0x380] sm:$0xff]  ;;  %v1725_v47 = vpack.c.bf16 %v537_v32, %v536_v31 }
  0x74   : > { %v2290_v37 = vmax.f32 %v247_v28, %v248_v29  ;;  %v219_v42 = vld [vmem:[%s2276_s9 + $0x20] sm:$0xff]  ;;  %v220_v43 = vld [vmem:[%s2276_s9 + $0x28] sm:$0xff]  ;;  %v221_v45 = vld [vmem:[%s2276_s9 + $0x30] sm:$0xff]  ;;  %v1757_v53 = vpack.c.bf16 %v569_v36, %v568_v33  ;;  %v1759_v54 = vpack.c.bf16 %v603_v39, %v602_v38 }
  0x75   : > { %v635_v44 = vld [vmem:[#allocation7 + $0x388] sm:$0xff]  ;;  %v222_v46 = vld [vmem:[%s2276_s9 + $0x38] sm:$0xff]  ;;  %1722 = vmatpush3.bf16.msra.mxu0 %v1721_v30  ;;  %v586_v48 = vld [vmem:[#allocation7 + $0x200] sm:$0xff]  ;;  %v249_v51 = vmax.f32 %v219_v42, %v221_v45 }
  0x76   : > { %297 = vst [vmem:[#allocation2 + $0x11] sm:$0xff] %v2290_v37  ;;  %v587_v49 = vld [vmem:[#allocation7 + $0x208] sm:$0xff]  ;;  %v618_v50 = vld [vmem:[#allocation7 + $0x300] sm:$0xff]  ;;  %v250_v52 = vmax.f32 %v220_v43, %v222_v46  ;;  %1754 = vmatpush3.bf16.msra.mxu1 %v1753_v34  ;;  %1724 = vmatprep.subr.bf16.mxu0 %v1723_v35  ;;  %v604_v56 = vld [vmem:[#allocation7 + $0x290] sm:$0xff]  ;;  %v1791_v59 = vpack.c.bf16 %v635_v44, %v634_v41 }
  0x77   : > { %v619_v55 = vld [vmem:[#allocation7 + $0x308] sm:$0xff]  ;;  %v605_v57 = vld [vmem:[#allocation7 + $0x298] sm:$0xff]  ;;  %1756 = vmatprep.subr.bf16.mxu1 %v1755_v40  ;;  %v305_v58 = vld [vmem:[#allocation2] sm:$0xff]  ;;  %v1761_v4 = vpack.c.bf16 %v587_v49, %v586_v48 }
  0x78   : > { %v2297_v60 = vmax.f32 %v249_v51, %v250_v52  ;;  %v636_v61 = vld [vmem:[#allocation7 + $0x390] sm:$0xff]  ;;  %v223_v62 = vld [vmem:[%s2276_s9 + $0x40] sm:$0xff]  ;;  %v224_v63 = vld [vmem:[%s2276_s9 + $0x48] sm:$0xff]  ;;  %v1793_v9 = vpack.c.bf16 %v619_v55, %v618_v50  ;;  %v1763_v15 = vpack.c.bf16 %v605_v57, %v604_v56 }
  0x79   : > { %v637_v0 = vld [vmem:[#allocation7 + $0x398] sm:$0xff]  ;;  %v225_v1 = vld [vmem:[%s2276_s9 + $0x50] sm:$0xff]  ;;  %1726 = vmatpush3.bf16.msra.mxu0 %v1725_v47  ;;  %v337_v3 = vld [vmem:[#allocation2 + $0x2] sm:$0xff] }
  0x7a   : > { %v226_v2 = vld [vmem:[%s2276_s9 + $0x58] sm:$0xff]  ;;  %298 = vst [vmem:[#allocation2 + $0x21] sm:$0xff] %v2297_v60  ;;  %v588_v5 = vld [vmem:[#allocation7 + $0x210] sm:$0xff]  ;;  %v251_v7 = vmax.f32 %v223_v62, %v225_v1  ;;  %1758 = vmatpush3.bf16.msra.mxu1 %v1757_v53  ;;  %1760 = vmatprep.subr.bf16.mxu0 %v1759_v54  ;;  %v606_v12 = vld [vmem:[#allocation7 + $0x2a0] sm:$0xff]  ;;  %v1795_v16 = vpack.c.bf16 %v637_v0, %v636_v61 }
  0x7b   : > { %v589_v6 = vld [vmem:[#allocation7 + $0x218] sm:$0xff]  ;;  %v252_v8 = vmax.f32 %v224_v63, %v226_v2  ;;  %v620_v10 = vld [vmem:[#allocation7 + $0x310] sm:$0xff]  ;;  %v607_v13 = vld [vmem:[#allocation7 + $0x2a8] sm:$0xff]  ;;  %1792 = vmatprep.subr.bf16.mxu1 %v1791_v59 }
  0x7c   : > { %v621_v11 = vld [vmem:[#allocation7 + $0x318] sm:$0xff]  ;;  %v638_v18 = vld [vmem:[#allocation7 + $0x3a0] sm:$0xff]  ;;  %v639_v19 = vld [vmem:[#allocation7 + $0x3a8] sm:$0xff]  ;;  %731 = vmatmul.mubr.f32.vlgmr.msra.gmra.mrb[0].mxu0 %v305_v58  ;;  %v1765_v23 = vpack.c.bf16 %v589_v6, %v588_v5  ;;  %v1767_v33 = vpack.c.bf16 %v607_v13, %v606_v12 }
  0x7d   : > { %v353_v14 = vld [vmem:[#allocation2 + $0x10] sm:$0xff]  ;;  %v2304_v17 = vmax.f32 %v251_v7, %v252_v8  ;;  %v227_v20 = vld [vmem:[%s2276_s9 + $0x60] sm:$0xff]  ;;  %v228_v21 = vld [vmem:[%s2276_s9 + $0x68] sm:$0xff]  ;;  %1762 = vmatpush3.bf16.msra.mxu0 %v1761_v4  ;;  %735 = vmatprep.mubr.f32.mxu0 %v2290_v37  ;;  %v1797_v32 = vpack.c.bf16 %v621_v11, %v620_v10  ;;  %v1799_v39 = vpack.c.bf16 %v639_v19, %v638_v18 }
  0x7e   : > { %835 = vmatprep.mubr.f32.mxu1 %v353_v14  ;;  %v229_v22 = vld [vmem:[%s2276_s9 + $0x70] sm:$0xff]  ;;  %v590_v24 = vld [vmem:[#allocation7 + $0x220] sm:$0xff]  ;;  %v591_v25 = vld [vmem:[#allocation7 + $0x228] sm:$0xff]  ;;  %1764 = vmatprep.subr.bf16.mxu0 %v1763_v15 }
  0x7f   : > { %836 = vmatmul.mubr.f32.vlgmr.msra.gmra.mrb[0].mxu1 %v337_v3  ;;  %299 = vst [vmem:[#allocation2 + $0x31] sm:$0xff] %v2304_v17  ;;  %v230_v26 = vld [vmem:[%s2276_s9 + $0x78] sm:$0xff]  ;;  %v253_v27 = vmax.f32 %v227_v20, %v229_v22  ;;  %v622_v29 = vld [vmem:[#allocation7 + $0x320] sm:$0xff]  ;;  %v623_v30 = vld [vmem:[#allocation7 + $0x328] sm:$0xff]  ;;  %v1769_v43 = vpack.c.bf16 %v591_v25, %v590_v24 }
  0x80   : > { %1794 = vmatpush3.bf16.msra.mxu1 %v1793_v9  ;;  %v2312_v28 = vld [vmem:[#allocation2 + $0x12] sm:$0xff]  ;;  %v254_v31 = vmax.f32 %v228_v21, %v230_v26  ;;  %736 = vmatmul.mubr.f32.gmra.mrb[2].mxu0 %v353_v14  ;;  %v231_v42 = vld [vmem:[%s2276_s9 + $0x80] sm:$0xff]  ;;  %v232_v44 = vld [vmem:[%s2276_s9 + $0x88] sm:$0xff]  ;;  %v1801_v52 = vpack.c.bf16 %v623_v30, %v622_v29 }
  0x81   : > { %1796 = vmatprep.subr.bf16.mxu1 %v1795_v16  ;;  %v608_v34 = vld [vmem:[#allocation7 + $0x2b0] sm:$0xff]  ;;  %v609_v35 = vld [vmem:[#allocation7 + $0x2b8] sm:$0xff]  ;;  %v2314_v38 = vld [vmem:[#allocation2 + $0x20] sm:$0xff]  ;;  %1766 = vmatpush3.bf16.msra.mxu0 %v1765_v23 }
  0x82   : > { %v640_v36 = vld [vmem:[#allocation7 + $0x3b0] sm:$0xff]  ;;  %v2316_v40 = vmax.f32 %v253_v27, %v254_v31  ;;  %v641_v41 = vld [vmem:[#allocation7 + $0x3b8] sm:$0xff]  ;;  %840 = vmatprep.mubr.f32.mxu1 %v2314_v38  ;;  %740 = vmatprep.mubr.f32.mxu0 %v2297_v60  ;;  %v2326_v51 = vld [vmem:[#allocation2 + $0x22] sm:$0xff]  ;;  %v1771_v53 = vpack.c.bf16 %v609_v35, %v608_v34 }
  0x83   : > { %v233_v45 = vld [vmem:[%s2276_s9 + $0x90] sm:$0xff]  ;;  %v234_v46 = vld [vmem:[%s2276_s9 + $0x98] sm:$0xff]  ;;  %841 = vmatmul.mubr.f32.gmra.mrb[2].mxu1 %v2312_v28  ;;  %1768 = vmatprep.subr.bf16.mxu0 %v1767_v33  ;;  %v610_v56 = vld [vmem:[#allocation7 + $0x2c0] sm:$0xff]  ;;  %v1803_v59 = vpack.c.bf16 %v641_v41, %v640_v36 }
  0x84   : > { %300 = vst [vmem:[#allocation2 + $0x41] sm:$0xff] %v2316_v40  ;;  %v592_v47 = vld [vmem:[#allocation7 + $0x230] sm:$0xff]  ;;  %v593_v48 = vld [vmem:[#allocation7 + $0x238] sm:$0xff]  ;;  %v255_v49 = vmax.f32 %v231_v42, %v233_v45  ;;  %v256_v50 = vmax.f32 %v232_v44, %v234_v46  ;;  %1798 = vmatpush3.bf16.msra.mxu1 %v1797_v32  ;;  %v611_v57 = vld [vmem:[#allocation7 + $0x2c8] sm:$0xff]  ;;  %741 = vmatmul.mubr.f32.gmra.mrb[4].mxu0 %v2314_v38 }
  0x85   : > { %v624_v54 = vld [vmem:[#allocation7 + $0x330] sm:$0xff]  ;;  %v625_v55 = vld [vmem:[#allocation7 + $0x338] sm:$0xff]  ;;  %1800 = vmatprep.subr.bf16.mxu1 %v1799_v39  ;;  %v642_v62 = vld [vmem:[#allocation7 + $0x3c0] sm:$0xff]  ;;  %1770 = vmatpush3.bf16.msra.mxu0 %v1769_v43  ;;  %v1773_v1 = vpack.c.bf16 %v593_v48, %v592_v47  ;;  %v1775_v6 = vpack.c.bf16 %v611_v57, %v610_v56 }
  0x86   : > { %v2328_v58 = vld [vmem:[#allocation2 + $0x30] sm:$0xff]  ;;  %v2331_v61 = vmax.f32 %v255_v49, %v256_v50  ;;  %v643_v63 = vld [vmem:[#allocation7 + $0x3c8] sm:$0xff]  ;;  %v594_v0 = vld [vmem:[#allocation7 + $0x240] sm:$0xff]  ;;  %745 = vmatprep.mubr.f32.mxu0 %v2304_v17  ;;  %1772 = vmatprep.subr.bf16.mxu0 %v1771_v53  ;;  %v1805_v14 = vpack.c.bf16 %v625_v55, %v624_v54 }
  0x87   : > { %845 = vmatprep.mubr.f32.mxu1 %v2328_v58  ;;  %v595_v2 = vld [vmem:[#allocation7 + $0x248] sm:$0xff]  ;;  %v235_v3 = vld [vmem:[%s2276_s9 + $0xa0] sm:$0xff]  ;;  %v2338_v5 = vld [vmem:[#allocation2 + $0x32] sm:$0xff]  ;;  %v1807_v20 = vpack.c.bf16 %v643_v63, %v642_v62 }
  0x88   : > { %v236_v4 = vld [vmem:[%s2276_s9 + $0xa8] sm:$0xff]  ;;  %846 = vmatmul.mubr.f32.gmra.mrb[4].mxu1 %v2326_v51  ;;  %301 = vst [vmem:[#allocation2 + $0x51] sm:$0xff] %v2331_v61  ;;  %v237_v7 = vld [vmem:[%s2276_s9 + $0xb0] sm:$0xff]  ;;  %v238_v8 = vld [vmem:[%s2276_s9 + $0xb8] sm:$0xff]  ;;  %746 = vmatmul.mubr.f32.gmra.mrb[6].mxu0 %v2328_v58  ;;  %v1777_v21 = vpack.c.bf16 %v595_v2, %v594_v0 }
  0x89   : > { %1802 = vmatpush3.bf16.msra.mxu1 %v1801_v52  ;;  %v626_v9 = vld [vmem:[#allocation7 + $0x340] sm:$0xff]  ;;  %v627_v10 = vld [vmem:[#allocation7 + $0x348] sm:$0xff]  ;;  %v257_v11 = vmax.f32 %v235_v3, %v237_v7  ;;  %v258_v12 = vmax.f32 %v236_v4, %v238_v8  ;;  %v612_v13 = vld [vmem:[#allocation7 + $0x2d0] sm:$0xff]  ;;  %1774 = vmatpush3.bf16.msra.mxu0 %v1773_v1 }
  0x8a   : > { %1804 = vmatprep.subr.bf16.mxu1 %v1803_v59  ;;  %v613_v15 = vld [vmem:[#allocation7 + $0x2d8] sm:$0xff]  ;;  %v644_v16 = vld [vmem:[#allocation7 + $0x3d0] sm:$0xff]  ;;  %750 = vmatprep.mubr.f32.mxu0 %v2316_v40  ;;  %v239_v25 = vld [vmem:[%s2276_s9 + $0xc0] sm:$0xff]  ;;  %v1809_v35 = vpack.c.bf16 %v627_v10, %v626_v9 }
  0x8b   : > { %v645_v18 = vld [vmem:[#allocation7 + $0x3d8] sm:$0xff]  ;;  %v2344_v19 = vld [vmem:[#allocation2 + $0x40] sm:$0xff]  ;;  %v2347_v22 = vmax.f32 %v257_v11, %v258_v12  ;;  %v596_v23 = vld [vmem:[#allocation7 + $0x250] sm:$0xff]  ;;  %1776 = vmatprep.subr.bf16.mxu0 %v1775_v6  ;;  %v1779_v29 = vpack.c.bf16 %v613_v15, %v612_v13 }
  0x8c   : > { %v597_v24 = vld [vmem:[#allocation7 + $0x258] sm:$0xff]  ;;  %850 = vmatprep.mubr.f32.mxu1 %v2344_v19  ;;  %v240_v26 = vld [vmem:[%s2276_s9 + $0xc8] sm:$0xff]  ;;  %v241_v27 = vld [vmem:[%s2276_s9 + $0xd0] sm:$0xff]  ;;  %751 = vmatmul.mubr.f32.gmra.mrb[8].mxu0 %v2344_v19  ;;  %v1811_v43 = vpack.c.bf16 %v645_v18, %v644_v16 }
  0x8d   : > { %851 = vmatmul.mubr.f32.gmra.mrb[6].mxu1 %v2338_v5  ;;  %302 = vst [vmem:[#allocation2 + $0x61] sm:$0xff] %v2347_v22  ;;  %v242_v30 = vld [vmem:[%s2276_s9 + $0xd8] sm:$0xff]  ;;  %v259_v31 = vmax.f32 %v239_v25, %v241_v27  ;;  %v614_v32 = vld [vmem:[#allocation7 + $0x2e0] sm:$0xff]  ;;  %v615_v33 = vld [vmem:[#allocation7 + $0x2e8] sm:$0xff]  ;;  %1778 = vmatpush3.bf16.msra.mxu0 %v1777_v21  ;;  %v1781_v44 = vpack.c.bf16 %v597_v24, %v596_v23 }
  0x8e   : > { %1806 = vmatpush3.bf16.msra.mxu1 %v1805_v14  ;;  %v2357_v34 = vld [vmem:[#allocation2 + $0x42] sm:$0xff]  ;;  %v628_v36 = vld [vmem:[#allocation7 + $0x350] sm:$0xff]  ;;  %v629_v39 = vld [vmem:[#allocation7 + $0x358] sm:$0xff]  ;;  %v260_v41 = vmax.f32 %v240_v26, %v242_v30  ;;  %755 = vmatprep.mubr.f32.mxu0 %v2331_v61  ;;  %v1783_v48 = vpack.c.bf16 %v615_v33, %v614_v32 }
  0x8f   : > { %v2359_v42 = vld [vmem:[#allocation2 + $0x50] sm:$0xff]  ;;  %1808 = vmatprep.subr.bf16.mxu1 %v1807_v20  ;;  %v646_v45 = vld [vmem:[#allocation7 + $0x3e0] sm:$0xff]  ;;  %v647_v46 = vld [vmem:[#allocation7 + $0x3e8] sm:$0xff]  ;;  %1780 = vmatprep.subr.bf16.mxu0 %v1779_v29  ;;  %v1813_v0 = vpack.c.bf16 %v629_v39, %v628_v36 }
  0x90   : > { %855 = vmatprep.mubr.f32.mxu1 %v2359_v42  ;;  %v2363_v47 = vmax.f32 %v259_v31, %v260_v41  ;;  %v598_v49 = vld [vmem:[#allocation7 + $0x260] sm:$0xff]  ;;  %v599_v50 = vld [vmem:[#allocation7 + $0x268] sm:$0xff]  ;;  %v245_v54 = vld [vmem:[%s2276_s9 + $0xf0] sm:$0xff]  ;;  %756 = vmatmul.mubr.f32.gmra.mrb[10].mxu0 %v2359_v42  ;;  %v1815_v3 = vpack.c.bf16 %v647_v46, %v646_v45 }
  0x91   : > { %v243_v52 = vld [vmem:[%s2276_s9 + $0xe0] sm:$0xff]  ;;  %856 = vmatmul.mubr.f32.gmra.mrb[8].mxu1 %v2357_v34  ;;  %v244_v53 = vld [vmem:[%s2276_s9 + $0xe8] sm:$0xff]  ;;  %v246_v55 = vld [vmem:[%s2276_s9 + $0xf8] sm:$0xff]  ;;  %1782 = vmatpush3.bf16.msra.mxu0 %v1781_v44  ;;  %v1785_v1 = vpack.c.bf16 %v599_v50, %v598_v49 }
  0x92   : > { %1810 = vmatpush3.bf16.msra.mxu1 %v1809_v35  ;;  %303 = vst [vmem:[#allocation2 + $0x71] sm:$0xff] %v2363_v47  ;;  %v261_v56 = vmax.f32 %v243_v52, %v245_v54  ;;  %v262_v57 = vmax.f32 %v244_v53, %v246_v55  ;;  %v616_v59 = vld [vmem:[#allocation7 + $0x2f0] sm:$0xff]  ;;  %v617_v62 = vld [vmem:[#allocation7 + $0x2f8] sm:$0xff]  ;;  %760 = vmatprep.mubr.f32.mxu0 %v2347_v22  ;;  %v630_v8 = vld [vmem:[#allocation7 + $0x360] sm:$0xff] }
  0x93   : > { %v2372_v63 = vld [vmem:[#allocation2 + $0x52] sm:$0xff]  ;;  %1812 = vmatprep.subr.bf16.mxu1 %v1811_v43  ;;  %1784 = vmatprep.subr.bf16.mxu0 %v1783_v48  ;;  %v631_v9 = vld [vmem:[#allocation7 + $0x368] sm:$0xff]  ;;  %v1787_v10 = vpack.c.bf16 %v617_v62, %v616_v59  ;;  %v650_v13 = vld [vmem:[#allocation7 + $0x400] sm:$0xff] }
  0x94   : > { %v2374_v2 = vld [vmem:[#allocation2 + $0x60] sm:$0xff]  ;;  %v2377_v4 = vmax.f32 %v261_v56, %v262_v57  ;;  %v600_v6 = vld [vmem:[#allocation7 + $0x270] sm:$0xff]  ;;  %v601_v7 = vld [vmem:[#allocation7 + $0x278] sm:$0xff]  ;;  %v1817_v18 = vpack.c.bf16 %v631_v9, %v630_v8 }
  0x95   : > { %860 = vmatprep.mubr.f32.mxu1 %v2374_v2  ;;  %v648_v11 = vld [vmem:[#allocation7 + $0x3f0] sm:$0xff]  ;;  %761 = vmatmul.mubr.f32.gmra.mrb[12].mxu0 %v2374_v2  ;;  %v649_v12 = vld [vmem:[#allocation7 + $0x3f8] sm:$0xff]  ;;  %v651_v14 = vld [vmem:[#allocation7 + $0x408] sm:$0xff]  ;;  %v1789_v15 = vpack.c.bf16 %v601_v7, %v600_v6 }
  0x96   : > { %861 = vmatmul.mubr.f32.gmra.mrb[10].mxu1 %v2372_v63  ;;  %304 = vst [vmem:[#allocation2 + $0x81] sm:$0xff] %v2377_v4  ;;  %1786 = vmatpush3.bf16.msra.mxu0 %v1785_v1  ;;  %v2383_v16 = vld [vmem:[#allocation2 + $0x62] sm:$0xff]  ;;  %v1819_v21 = vpack.c.bf16 %v649_v12, %v648_v11  ;;  %v632_v23 = vld [vmem:[#allocation7 + $0x370] sm:$0xff]  ;;  %v633_v24 = vld [vmem:[#allocation7 + $0x378] sm:$0xff]  ;;  %v1823_v25 = vpack.c.bf16 %v651_v14, %v650_v13 }
  0x97   : > { %1814 = vmatpush3.bf16.msra.mxu1 %v1813_v0  ;;  %765 = vmatprep.mubr.f32.mxu0 %v2363_v47  ;;  %v652_v26 = vld [vmem:[#allocation7 + $0x410] sm:$0xff]  ;;  %v653_v27 = vld [vmem:[#allocation7 + $0x418] sm:$0xff]  ;;  %v1821_v30 = vpack.c.bf16 %v633_v24, %v632_v23  ;;  %v654_v33 = vld [vmem:[#allocation7 + $0x420] sm:$0xff] }
  0x98   : > { %1816 = vmatprep.subr.bf16.mxu1 %v1815_v3  ;;  %1788 = vmatprep.subr.bf16.mxu0 %v1787_v10  ;;  %v1827_v32 = vpack.c.bf16 %v653_v27, %v652_v26  ;;  %v655_v35 = vld [vmem:[#allocation7 + $0x428] sm:$0xff]  ;;  %v657_v36 = vld [vmem:[#allocation7 + $0x438] sm:$0xff] }
  0x99   : > { %v2386_v20 = vld [vmem:[#allocation2 + $0x70] sm:$0xff]  ;;  %v659_v41 = vld [vmem:[#allocation7 + $0x448] sm:$0xff]  ;;  %v661_v43 = vld [vmem:[#allocation7 + $0x458] sm:$0xff] }
  0x9a   : > { %865 = vmatprep.mubr.f32.mxu1 %v2386_v20  ;;  %766 = vmatmul.mubr.f32.gmra.mrb[14].mxu0 %v2386_v20  ;;  %v2391_v29 = vld [vmem:[#allocation2 + $0x72] sm:$0xff]  ;;  %v663_v44 = vld [vmem:[#allocation7 + $0x468] sm:$0xff] }
  0x9b   : > { %866 = vmatmul.mubr.f32.gmra.mrb[12].mxu1 %v2383_v16  ;;  %1790 = vmatpush3.bf16.msra.mxu0 %v1789_v15  ;;  %v665_v45 = vld [vmem:[#allocation7 + $0x478] sm:$0xff] }
  0x9c   : > { %1818 = vmatpush3.bf16.msra.mxu1 %v1817_v18  ;;  %940 = vmatprep.mubr.f32.mxu0 %v2312_v28  ;;  %v1831_v28 = vpack.c.bf16 %v655_v35, %v654_v33  ;;  %v441_v48 = vld [vmem:[#allocation2 + $0x92] sm:$0xff] }
  0x9d   : > { %v2394_v31 = vld [vmem:[#allocation2 + $0x80] sm:$0xff]  ;;  %1820 = vmatprep.subr.bf16.mxu1 %v1819_v21  ;;  %1824 = vmatprep.subr.bf16.mxu0 %v1823_v25 }
  0x9e   : > { %870 = vmatprep.mubr.f32.mxu1 %v2394_v31  ;;  %941 = vmatmul.mubr.f32.vlgmr.msra.gmra.mrb[16].mxu0 %v2290_v37  ;;  %v656_v37 = vld [vmem:[#allocation7 + $0x430] sm:$0xff] }
  0x9f   : > { %871 = vmatmul.mubr.f32.gmra.mrb[14].mxu1 %v2391_v29  ;;  %1826 = vmatpush3.bf16.msra.mxu0 %v1823_v25  ;;  %v1835_v39 = vpack.c.bf16 %v657_v36, %v656_v37 }
  0xa0   : > { %1822 = vmatpush3.bf16.msra.mxu1 %v1821_v30  ;;  %1045 = vmatprep.mubr.f32.mxu1 %v2297_v60 }
  0xa1   : > { %1855 = vmatprep.subr.bf16.mxu1 %v1823_v25  ;;  %945 = vmatprep.mubr.f32.mxu0 %v2326_v51 }
  0xa2   : > { %946 = vmatmul.mubr.f32.gmra.mrb[18].mxu0 %v2297_v60  ;;  %1828 = vmatprep.subr.bf16.mxu0 %v1827_v32  ;;  %v658_v60 = vld [vmem:[#allocation7 + $0x440] sm:$0xff] }
  0xa3   : > { %1046 = vmatmul.mubr.f32.vlgmr.msra.gmra.mrb[16].mxu1 %v2314_v38  ;;  %1830 = vmatpush3.bf16.msra.mxu0 %v1827_v32  ;;  %v1839_v38 = vpack.c.bf16 %v659_v41, %v658_v60 }
  0xa4   : > { %1863 = vmatpush3.bf16.msra.mxu1 %v1823_v25  ;;  %1050 = vmatprep.mubr.f32.mxu1 %v2304_v17 }
  0xa5   : > { %1856 = vmatprep.subr.bf16.mxu1 %v1827_v32  ;;  %950 = vmatprep.mubr.f32.mxu0 %v2338_v5 }
  0xa6   : > { %951 = vmatmul.mubr.f32.gmra.mrb[20].mxu0 %v2304_v17  ;;  %1832 = vmatprep.subr.bf16.mxu0 %v1831_v28  ;;  %v660_v17 = vld [vmem:[#allocation7 + $0x450] sm:$0xff] }
  0xa7   : > { %1051 = vmatmul.mubr.f32.gmra.mrb[18].mxu1 %v2328_v58  ;;  %1834 = vmatpush3.bf16.msra.mxu0 %v1831_v28  ;;  %v1843_v58 = vpack.c.bf16 %v661_v43, %v660_v17 }
  0xa8   : > { %1864 = vmatpush3.bf16.msra.mxu1 %v1827_v32  ;;  %1055 = vmatprep.mubr.f32.mxu1 %v2316_v40 }
  0xa9   : > { %1857 = vmatprep.subr.bf16.mxu1 %v1831_v28  ;;  %955 = vmatprep.mubr.f32.mxu0 %v2357_v34 }
  0xaa   : > { %956 = vmatmul.mubr.f32.gmra.mrb[22].mxu0 %v2316_v40  ;;  %1836 = vmatprep.subr.bf16.mxu0 %v1835_v39  ;;  %v662_v40 = vld [vmem:[#allocation7 + $0x460] sm:$0xff] }
  0xab   : > { %1056 = vmatmul.mubr.f32.gmra.mrb[20].mxu1 %v2344_v19  ;;  %1838 = vmatpush3.bf16.msra.mxu0 %v1835_v39  ;;  %v1847_v19 = vpack.c.bf16 %v663_v44, %v662_v40 }
  0xac   : > { %1865 = vmatpush3.bf16.msra.mxu1 %v1831_v28  ;;  %1060 = vmatprep.mubr.f32.mxu1 %v2331_v61 }
  0xad   : > { %1858 = vmatprep.subr.bf16.mxu1 %v1835_v39  ;;  %960 = vmatprep.mubr.f32.mxu0 %v2372_v63 }
  0xae   : > { %961 = vmatmul.mubr.f32.gmra.mrb[24].mxu0 %v2331_v61  ;;  %1840 = vmatprep.subr.bf16.mxu0 %v1839_v38  ;;  %v664_v61 = vld [vmem:[#allocation7 + $0x470] sm:$0xff] }
  0xaf   : > { %1061 = vmatmul.mubr.f32.gmra.mrb[22].mxu1 %v2359_v42  ;;  %1842 = vmatpush3.bf16.msra.mxu0 %v1839_v38  ;;  %v392_v42 = vld [vmem:[#allocation2 + $0x82] sm:$0xff]  ;;  %v1851_v46 = vpack.c.bf16 %v665_v45, %v664_v61 }
  0xb0   : > { %1866 = vmatpush3.bf16.msra.mxu1 %v1835_v39  ;;  %1065 = vmatprep.mubr.f32.mxu1 %v2347_v22 }
  0xb1   : > { %1859 = vmatprep.subr.bf16.mxu1 %v1839_v38  ;;  %965 = vmatprep.mubr.f32.mxu0 %v2383_v16 }
  0xb2   : > { %966 = vmatmul.mubr.f32.gmra.mrb[26].mxu0 %v2347_v22  ;;  %1844 = vmatprep.subr.bf16.mxu0 %v1843_v58  ;;  %v425_v22 = vld [vmem:[#allocation2 + $0x91] sm:$0xff] }
  0xb3   : > { %1066 = vmatmul.mubr.f32.gmra.mrb[24].mxu1 %v2374_v2  ;;  %1846 = vmatpush3.bf16.msra.mxu0 %v1843_v58 }
  0xb4   : > { %1867 = vmatpush3.bf16.msra.mxu1 %v1839_v38  ;;  %1070 = vmatprep.mubr.f32.mxu1 %v2363_v47 }
  0xb5   : > { %1860 = vmatprep.subr.bf16.mxu1 %v1843_v58  ;;  %970 = vmatprep.mubr.f32.mxu0 %v2391_v29 }
  0xb6   : > { %971 = vmatmul.mubr.f32.gmra.mrb[28].mxu0 %v2363_v47  ;;  %1848 = vmatprep.subr.bf16.mxu0 %v1847_v19  ;;  %v409_v47 = vld [vmem:[#allocation2 + $0x90] sm:$0xff] }
  0xb7   : > { %1071 = vmatmul.mubr.f32.gmra.mrb[26].mxu1 %v2386_v20  ;;  %1850 = vmatpush3.bf16.msra.mxu0 %v1847_v19 }
  0xb8   : > { %1868 = vmatpush3.bf16.msra.mxu1 %v1843_v58  ;;  %1075 = vmatprep.mubr.f32.mxu1 %v2377_v4 }
  0xb9   : > { %1861 = vmatprep.subr.bf16.mxu1 %v1847_v19  ;;  %975 = vmatprep.mubr.f32.mxu0 %v392_v42 }
  0xba   : > { %976 = vmatmul.mubr.f32.gmra.mrb[30].mxu0 %v2377_v4  ;;  %1852 = vmatprep.subr.bf16.mxu0 %v1851_v46 }
  0xbb   : > { %1076 = vmatmul.mubr.f32.gmra.mrb[28].mxu1 %v2394_v31  ;;  %1854 = vmatpush3.bf16.msra.mxu0 %v1851_v46 }
  0xbc   : > { %1869 = vmatpush3.bf16.msra.mxu1 %v1847_v19  ;;  %1080 = vmatprep.mubr.f32.mxu1 %v425_v22 }
  0xbd   : > { %1862 = vmatprep.subr.bf16.mxu1 %v1851_v46  ;;  %1683 = vmatprep.mubr.f32.mxu0 %v2326_v51 }
  0xbe   : > { %1684 = vmatmul.mubr.f32.vlgmr.msra.gmra.mrb[32].mxu0 %v2338_v5 }
  0xbf   : > { %1081 = vmatmul.mubr.f32.gmra.mrb[30].mxu1 %v409_v47  ;;  %1686 = vmatprep.mubr.f32.mxu0 %v2357_v34 }
  0xc0   : > { %1870 = vmatpush3.bf16.msra.mxu1 %v1851_v46  ;;  %1689 = vmatprep.mubr.f32.mxu1 %v2383_v16 }
  0xc2   : > { %1687 = vmatmul.mubr.f32.gmra.mrb[34].mxu0 %v2372_v63 }
  0xc3   : > { %1690 = vmatmul.mubr.f32.vlgmr.msra.gmra.mrb[32].mxu1 %v2391_v29 }
  0xc4   : > { %1692 = vmatprep.mubr.f32.mxu1 %v392_v42 }
  0xc7   : > { %1693 = vmatmul.mubr.f32.gmra.mrb[34].mxu1 %v441_v48 }
 0x14f   : > { %v1435_v49 = vpop.f32.mrb[0].mxu0 }
 0x150   : > { %v1436_v52 = vpop.f32.mrb[1].mxu0 }
 0x151   : > { %v1437_v53 = vadd.f32 %v1436_v52, %v1435_v49 }
 0x152   : > { %v1491_v50 = vpop.f32.mrb[0].mxu1 }
 0x153   : > { %v1492_v51 = vpop.f32.mrb[1].mxu1  ;;  %v1438_v5 = vpop.f32.mrb[2].mxu0 }
 0x154   : > { %v1493_v54 = vadd.f32 %v1492_v51, %v1491_v50  ;;  %v1439_v56 = vpop.f32.mrb[3].mxu0 }
 0x155   : > { %v1440_v57 = vadd.f32 %v1439_v56, %v1438_v5 }
 0x156   : > { %v838_v55 = vadd.f32 %v1493_v54, %v1437_v53  ;;  %v1494_v34 = vpop.f32.mrb[2].mxu1 }
 0x157   : > { %v1495_v59 = vpop.f32.mrb[3].mxu1  ;;  %v1441_v0 = vpop.f32.mrb[4].mxu0 }
 0x158   : > { %v1496_v62 = vadd.f32 %v1495_v59, %v1494_v34  ;;  %v1442_v63 = vpop.f32.mrb[5].mxu0 }
 0x159   : > { %v1443_v3 = vadd.f32 %v1442_v63, %v1441_v0 }
 0x15a   : > { %v843_v1 = vadd.f32 %v1496_v62, %v1440_v57 }
 0x15b   : > { %v1497_v2 = vpop.f32.mrb[4].mxu1  ;;  %v1444_v7 = vpop.f32.mrb[6].mxu0 }
 0x15c   : > { %v1498_v4 = vpop.f32.mrb[5].mxu1  ;;  %v1445_v8 = vpop.f32.mrb[7].mxu0 }
 0x15d   : > { %v1499_v6 = vadd.f32 %v1498_v4, %v1497_v2  ;;  %v1446_v10 = vadd.f32 %v1445_v8, %v1444_v7 }
 0x15f   : > { %v848_v9 = vadd.f32 %v1499_v6, %v1443_v3  ;;  %v1447_v13 = vpop.f32.mrb[8].mxu0 }
 0x160   : > { %v1500_v11 = vpop.f32.mrb[6].mxu1  ;;  %v1448_v15 = vpop.f32.mrb[9].mxu0 }
 0x161   : > { %v1501_v12 = vpop.f32.mrb[7].mxu1  ;;  %v1449_v16 = vadd.f32 %v1448_v15, %v1447_v13 }
 0x162   : > { %v1502_v14 = vadd.f32 %v1501_v12, %v1500_v11 }
 0x163   : > { %v1450_v23 = vpop.f32.mrb[10].mxu0 }
 0x164   : > { %v853_v18 = vadd.f32 %v1502_v14, %v1446_v10  ;;  %v1503_v20 = vpop.f32.mrb[8].mxu1  ;;  %v1451_v25 = vpop.f32.mrb[11].mxu0 }
 0x165   : > { %v1504_v21 = vpop.f32.mrb[9].mxu1  ;;  %v1452_v26 = vadd.f32 %v1451_v25, %v1450_v23 }
 0x166   : > { %v1505_v24 = vadd.f32 %v1504_v21, %v1503_v20 }
 0x168   : > { %v858_v27 = vadd.f32 %v1505_v24, %v1449_v16  ;;  %v1453_v30 = vpop.f32.mrb[12].mxu0 }
 0x169   : > { %v1506_v29 = vpop.f32.mrb[10].mxu1  ;;  %v1454_v32 = vpop.f32.mrb[13].mxu0 }
 0x16a   : > { %v1507_v31 = vpop.f32.mrb[11].mxu1  ;;  %v1455_v35 = vadd.f32 %v1454_v32, %v1453_v30 }
 0x16b   : > { %v1508_v33 = vadd.f32 %v1507_v31, %v1506_v29 }
 0x16d   : > { %v863_v28 = vadd.f32 %v1508_v33, %v1452_v26  ;;  %v1456_v37 = vpop.f32.mrb[14].mxu0 }
 0x16e   : > { %v1509_v36 = vpop.f32.mrb[12].mxu1  ;;  %v1457_v39 = vpop.f32.mrb[15].mxu0 }
 0x16f   : > { %v1510_v60 = vpop.f32.mrb[13].mxu1  ;;  %v1458_v41 = vadd.f32 %v1457_v39, %v1456_v37 }
 0x170   : > { %v1511_v38 = vadd.f32 %v1510_v60, %v1509_v36 }
 0x171   : > { %v1547_v17 = vpop.f32.mrb[16].mxu0 }
 0x172   : > { %v868_v43 = vadd.f32 %v1511_v38, %v1455_v35  ;;  %v1512_v58 = vpop.f32.mrb[14].mxu1  ;;  %v1548_v40 = vpop.f32.mrb[17].mxu0 }
 0x173   : > { %v1513_v44 = vpop.f32.mrb[15].mxu1  ;;  %v1549_v19 = vadd.f32 %v1548_v40, %v1547_v17 }
 0x174   : > { %v1514_v61 = vadd.f32 %v1513_v44, %v1512_v58 }
 0x175   : > { %v943_v45 = vadd.f32 %v1549_v19, %v838_v55  ;;  %v1550_v42 = vpop.f32.mrb[18].mxu0 }
 0x176   : > { %v873_v46 = vadd.f32 %v1514_v61, %v1458_v41  ;;  %v1603_v22 = vpop.f32.mrb[16].mxu1  ;;  %v1551_v47 = vpop.f32.mrb[19].mxu0 }
 0x177   : > { %v1604_v48 = vpop.f32.mrb[17].mxu1  ;;  %v1552_v49 = vadd.f32 %v1551_v47, %v1550_v42 }
 0x178   : > { %v1605_v50 = vadd.f32 %v1604_v48, %v1603_v22 }
 0x179   : > { %v948_v52 = vadd.f32 %v1552_v49, %v843_v1  ;;  %v1553_v53 = vpop.f32.mrb[20].mxu0 }
 0x17a   : > { %v1606_v51 = vpop.f32.mrb[18].mxu1  ;;  %v1554_v54 = vpop.f32.mrb[21].mxu0  ;;  %v1048_v5 = vadd.f32 %v1605_v50, %v943_v45 }
 0x17b   : > { %v1607_v56 = vpop.f32.mrb[19].mxu1  ;;  %v1555_v34 = vadd.f32 %v1554_v54, %v1553_v53 }
 0x17c   : > { %v1608_v57 = vadd.f32 %v1607_v56, %v1606_v51 }
 0x17d   : > { %v953_v59 = vadd.f32 %v1555_v34, %v848_v9  ;;  %v1556_v62 = vpop.f32.mrb[22].mxu0 }
 0x17e   : > { %v1609_v0 = vpop.f32.mrb[20].mxu1  ;;  %v1557_v63 = vpop.f32.mrb[23].mxu0  ;;  %v1053_v55 = vadd.f32 %v1608_v57, %v948_v52 }
 0x17f   : > { %v1610_v2 = vpop.f32.mrb[21].mxu1  ;;  %v1558_v3 = vadd.f32 %v1557_v63, %v1556_v62 }
 0x180   : > { %v1611_v4 = vadd.f32 %v1610_v2, %v1609_v0 }
 0x181   : > { %v958_v6 = vadd.f32 %v1558_v3, %v853_v18  ;;  %v1559_v7 = vpop.f32.mrb[24].mxu0 }
 0x182   : > { %v1612_v8 = vpop.f32.mrb[22].mxu1  ;;  %v1560_v10 = vpop.f32.mrb[25].mxu0  ;;  %v1058_v1 = vadd.f32 %v1611_v4, %v953_v59 }
 0x183   : > { %v1613_v11 = vpop.f32.mrb[23].mxu1  ;;  %v1561_v12 = vadd.f32 %v1560_v10, %v1559_v7 }
 0x184   : > { %v1614_v13 = vadd.f32 %v1613_v11, %v1612_v8 }
 0x185   : > { %v963_v14 = vadd.f32 %v1561_v12, %v858_v27  ;;  %v1562_v15 = vpop.f32.mrb[26].mxu0 }
 0x186   : > { %v1615_v16 = vpop.f32.mrb[24].mxu1  ;;  %v1563_v20 = vpop.f32.mrb[27].mxu0  ;;  %v1063_v9 = vadd.f32 %v1614_v13, %v958_v6 }
 0x187   : > { %v1616_v21 = vpop.f32.mrb[25].mxu1  ;;  %v1564_v23 = vadd.f32 %v1563_v20, %v1562_v15 }
 0x188   : > { %v1617_v24 = vadd.f32 %v1616_v21, %v1615_v16 }
 0x189   : > { %v968_v25 = vadd.f32 %v1564_v23, %v863_v28  ;;  %v1565_v26 = vpop.f32.mrb[28].mxu0 }
 0x18a   : > { %v1618_v29 = vpop.f32.mrb[26].mxu1  ;;  %v1566_v18 = vpop.f32.mrb[29].mxu0  ;;  %v1068_v30 = vadd.f32 %v1617_v24, %v963_v14 }
 0x18b   : > { %v1619_v31 = vpop.f32.mrb[27].mxu1  ;;  %v1567_v32 = vadd.f32 %v1566_v18, %v1565_v26 }
 0x18c   : > { %v1620_v33 = vadd.f32 %v1619_v31, %v1618_v29 }
 0x18d   : > { %v973_v35 = vadd.f32 %v1567_v32, %v868_v43  ;;  %v1568_v37 = vpop.f32.mrb[30].mxu0 }
 0x18e   : > { %v1621_v36 = vpop.f32.mrb[28].mxu1  ;;  %v1569_v27 = vpop.f32.mrb[31].mxu0  ;;  %v1073_v39 = vadd.f32 %v1620_v33, %v968_v25 }
 0x18f   : > { %v1622_v60 = vpop.f32.mrb[29].mxu1  ;;  %v1570_v41 = vadd.f32 %v1569_v27, %v1568_v37 }
 0x190   : > { %v1623_v38 = vadd.f32 %v1622_v60, %v1621_v36 }
 0x191   : > { %v978_v17 = vadd.f32 %v1570_v41, %v873_v46  ;;  %v1685_v58 = vpop.f32.mrb[32].mxu0 }
 0x192   : > { %v1624_v40 = vpop.f32.mrb[30].mxu1  ;;  %v1158_v28 = vadd.f32 %v1685_v58, %v1053_v55  ;;  %v1152_v44 = vpop.f32.mrb[33].mxu0  ;;  %v1078_v19 = vadd.f32 %v1623_v38, %v973_v35 }
 0x193   : > { %v1625_v61 = vpop.f32.mrb[31].mxu1  ;;  %v1153_v45 = vadd.f32 %v1152_v44, %v1048_v5 }
 0x194   : > { %v1626_v42 = vadd.f32 %v1625_v61, %v1624_v40  ;;  %1192 = vst [vmem:[%s2433_s20 + $0x8] sm:$0xff] %v1158_v28  ;;  %v1214_v43 = vmul.f32 %v1158_v28, %v1158_v28 }
 0x195   : > { %1191 = vst [vmem:[%s2433_s20] sm:$0xff] %v1153_v45  ;;  %v1199_v46 = vadd.f32 %v1158_v28, %v1153_v45  ;;  %v1213_v22 = vmul.f32 %v1153_v45, %v1153_v45  ;;  %v1688_v47 = vpop.f32.mrb[34].mxu0 }
 0x196   : > { %v1691_v48 = vpop.f32.mrb[32].mxu1  ;;  %v1168_v49 = vadd.f32 %v1688_v47, %v1063_v9  ;;  %v1083_v50 = vadd.f32 %v1626_v42, %v978_v17  ;;  %v1162_v52 = vpop.f32.mrb[35].mxu0 }
 0x197   : > { %v1178_v53 = vadd.f32 %v1691_v48, %v1073_v39  ;;  %v1221_v51 = vadd.f32 %v1214_v43, %v1213_v22  ;;  %v1172_v54 = vpop.f32.mrb[33].mxu1  ;;  %v1163_v5 = vadd.f32 %v1162_v52, %v1058_v1 }
 0x198   : > { %v1173_v56 = vadd.f32 %v1172_v54, %v1068_v30  ;;  %1194 = vst [vmem:[%s2433_s20 + $0x18] sm:$0xff] %v1168_v49  ;;  %v1216_v62 = vmul.f32 %v1168_v49, %v1168_v49 }
 0x199   : > { %1196 = vst [vmem:[%s2433_s20 + $0x28] sm:$0xff] %v1178_v53  ;;  %1193 = vst [vmem:[%s2433_s20 + $0x10] sm:$0xff] %v1163_v5  ;;  %v1200_v34 = vadd.f32 %v1199_v46, %v1163_v5  ;;  %v1215_v57 = vmul.f32 %v1163_v5, %v1163_v5  ;;  %v1218_v8 = vmul.f32 %v1178_v53, %v1178_v53 }
 0x19a   : > { %1195 = vst [vmem:[%s2433_s20 + $0x20] sm:$0xff] %v1173_v56  ;;  %v1694_v59 = vpop.f32.mrb[34].mxu1  ;;  %v1217_v4 = vmul.f32 %v1173_v56, %v1173_v56 }
 0x19b   : > { %v1188_v0 = vadd.f32 %v1694_v59, %v1083_v50  ;;  %v1201_v63 = vadd.f32 %v1200_v34, %v1168_v49  ;;  %v1222_v55 = vadd.f32 %v1221_v51, %v1215_v57  ;;  %v1182_v2 = vpop.f32.mrb[35].mxu1 }
 0x19c   : > { %v1183_v3 = vadd.f32 %v1182_v2, %v1078_v19 }
 0x19d   : > { %1198 = vst [vmem:[%s2433_s20 + $0x38] sm:$0xff] %v1188_v0  ;;  %v1223_v6 = vadd.f32 %v1222_v55, %v1216_v62  ;;  %v1202_v7 = vadd.f32 %v1201_v63, %v1173_v56 }
 0x19e   : > { %1197 = vst [vmem:[%s2433_s20 + $0x30] sm:$0xff] %v1183_v3 }
 0x19f   : > { %v1203_v10 = vadd.f32 %v1202_v7, %v1178_v53  ;;  %v1224_v1 = vadd.f32 %v1223_v6, %v1217_v4 }
 0x1a0   : > { %2011 = shalt.err (!%p2008_p7)
}
 0x1a1   : > { %s2012_s30 = scalar_lea.hbm %s2448_s10, 1024  ;;  %s2016_s8 = scalar_lea.hbm %s2527_s2, 2048 }
 0x1a2   : > { %p2013_p9 = scmp.ne.s32.totalorder %s2448_s10, %s2012_s30  ;;  %p2017_p5 = scmp.lt.u32.totalorder %s2448_s10, %s2527_s2 }
 0x1a3   : > { %p2018_p11 = scmp.lt.u32.totalorder %s2016_s8, %s2012_s30  ;;  %p2020_p4 = scmp.lt.u32.totalorder %s2012_s30, %s2448_s10 }
 0x1a4   : > { %p2014_p2 = pnand %p2013_p9, %p2224_p12 }
 0x1a5   : > { %p2019_p1 = por %p2018_p11, %p2017_p5 }
 0x1a6   : > { %p2015_p0 = pneg %p2014_p2 }
 0x1a7   : > { %p2021_p6 = por %p2020_p4, %p2019_p1 }
 0x1a9   : > { %p2022_p8 = pnand %p2021_p6, %p2015_p0 }
 0x1ab   : > { %2025 = shalt.err (!%p2022_p8)
}
 0x1ac   : > { %s2110_s20 = smov 128   ;;  %s2111_s25 = smov 8   ;;  %v1204_v11 = vadd.f32 %v1203_v10, %v1183_v3  ;;  %v1219_v12 = vmul.f32 %v1183_v3, %v1183_v3  ;;  %v1225_v13 = vadd.f32 %v1224_v1, %v1218_v8  ;;  %v1220_v14 = vmul.f32 %v1188_v0, %v1188_v0 }
 0x1ad   : > { %1877 = dma.vmem_to_hbm [thread:$0]  (%p2224_p12), %s2442_s4, 1024, %s2448_s10, %s1236_s11, %s2110_s20, %s2110_s20, %s2111_s25  }
 0x1ae   : > { %v1205_v15 = vadd.f32 %v1204_v11, %v1188_v0  ;;  %v1226_v16 = vadd.f32 %v1225_v13, %v1219_v12  ;;  %s1393_s26 = sshll.u32 %s2272_s6, 1  ;;  %s1398_s4 = sshll.u32 %s2154_s16, 5 }
 0x1af   : > { %s214_s5 = scalar_lea.vmem [#allocation10], %s1393_s26  ;;  %s2481_s28 = scalar_lea.hbm %s2528_s3, %s1398_s4 }
 0x1b0   : > { %v1206_v20 = vrot.slane %v1205_v15, 4  ;;  %v1227_v9 = vadd.f32 %v1226_v16, %v1220_v14  ;;  %s1270_s10 = sshll.u32 %s214_s5, 4  ;;  %s1241_s29 = scalar_lea.sflag [#allocation11], %s2272_s6  ;;  %s2483_s10 = int_to_ptr.vmem [resolvable:$true] %s1270_s10 }
 0x1b1   : > { %s2026_s23 = scalar_lea.vmem %s2483_s10, 32  ;;  %s2112_s16 = smov [#allocation10]  }
 0x1b2   : > { %v1207_v21 = vadd.f32 %v1206_v20, %v1205_v15  ;;  %v1228_v23 = vrot.slane %v1227_v9, 4  ;;  %p2027_p10 = scmp.ne.s32.totalorder %s2483_s10, %s2026_s23  ;;  %s2030_s30 = sshll.u32 %s2112_s16, 4  ;;  %s2031_s30 = int_to_ptr.vmem [resolvable:$false] %s2030_s30 }
 0x1b3   : > { %s2032_s22 = scalar_lea.vmem %s2031_s30, 64  ;;  %p2033_p7 = scmp.lt.s32.totalorder %s2483_s10, %s2031_s30 }
 0x1b4   : > { %v1208_v24 = vrot.slane %v1207_v21, 2  ;;  %v1229_v25 = vadd.f32 %v1228_v23, %v1227_v9  ;;  %p2028_p13 = pnand %p2027_p10, %p2224_p12  ;;  %p2034_p9 = scmp.lt.s32.totalorder %s2032_s22, %s2026_s23 }
 0x1b6   : > { %v1209_v26 = vadd.f32 %v1208_v24, %v1207_v21  ;;  %v1230_v29 = vrot.slane %v1229_v25, 2  ;;  %p2029_p3 = pneg %p2028_p13  ;;  %p2035_p2 = por %p2034_p9, %p2033_p7 }
 0x1b8   : > { %v1210_v18 = vrot.slane %v1209_v26, 1  ;;  %v1231_v30 = vadd.f32 %v1230_v29, %v1229_v25  ;;  %p2036_p0 = pnand %p2035_p2, %p2029_p3 }
 0x1ba   : > { %v1211_v31 = vadd.f32 %v1210_v18, %v1209_v26  ;;  %v1232_v32 = vrot.slane %v1231_v30, 1 }
 0x1bc   : > { %1212 = vst [vmem:[%s214_s5] sm:$0x1] %v1211_v31  ;;  %v1233_v33 = vadd.f32 %v1232_v32, %v1231_v30 }
 0x1be   : > { %1234 = vst [vmem:[%s214_s5 + $0x1] sm:$0x1] %v1233_v33 }
 0x1bf   : > { %2039 = shalt.err (!%p2036_p0)
}
 0x1c0   : > { %s2040_s6 = scalar_lea.hbm %s2481_s28, 32  ;;  %s2044_s9 = scalar_lea.hbm %s2528_s3, 64 }
 0x1c1   : > { %p2041_p5 = scmp.ne.s32.totalorder %s2481_s28, %s2040_s6  ;;  %p2045_p4 = scmp.lt.u32.totalorder %s2481_s28, %s2528_s3 }
 0x1c2   : > { %p2046_p6 = scmp.lt.u32.totalorder %s2044_s9, %s2040_s6  ;;  %p2048_p10 = scmp.lt.u32.totalorder %s2040_s6, %s2481_s28 }
 0x1c3   : > { %p2042_p11 = pnand %p2041_p5, %p2224_p12 }
 0x1c4   : > { %p2047_p8 = por %p2046_p6, %p2045_p4 }
 0x1c5   : > { %p2043_p1 = pneg %p2042_p11 }
 0x1c6   : > { %p2049_p13 = por %p2048_p10, %p2047_p8 }
 0x1c8   : > { %p2050_p3 = pnand %p2049_p13, %p2043_p1 }
 0x1ca   : > { %2053 = shalt.err (!%p2050_p3)
}
 0x1cb   : > { %1878 = dma.vmem_to_hbm [thread:$0]  (%p2224_p12), %s2483_s10, 32, %s2481_s28, %s1241_s29  }
 0x1cc PF: > { %s1282_s25 = sand.u32 1, %s2088_s12   ;;  %p2543_p7 = scmp.ne.s32.totalorder %s2533_s19, 0 }
 0x1cd   : > { %p2544_p9 = scmp.ge.s32.totalorder %s2100_s15, 2  ;;  %s1283_s26 = scalar_lea.sflag [#allocation6], %s1282_s25 }
 0x1cf   : > { %p1890_p2 = pnand %p2544_p9, %p2543_p7 }
 0x1d1   : > { %2079 = dma.done.wait (!%p1890_p2), %s1283_s26, 1024  }
 0x1d2   : > { %2081 = vsyncadd (!%p1890_p2), %s1283_s26, 4294966272  ;;  %s1292_s4 = scalar_lea.sflag [#allocation11], %s1282_s25 }
 0x1d3   : > { %2083 = dma.done.wait (!%p1890_p2), %s1292_s4, 32  }
 0x1d4   : > { %2085 = vsyncadd (!%p1890_p2), %s1292_s4, 4294967264  ;;  %p21_p12 = scmp.ge.s32.totalorder %s2189_s24, 4   ;;  %s2545_s12 = smov %s2092_s13 }
 0x1d5   : > { %s2546_s13 = smov %s2096_s14  ;;  %s2547_s14 = smov %s2220_s17 }
 0x1d6   : > { %s2548_s15 = smov %s2189_s24  ;;  %23 = sbr.rel (!%p21_p12) target bundleno = 8 (0x8), region = 97 }
 0x1dd   :  { %1297 = vsyncpa [#allocation5], 1 }
 0x1de   :  { %1299 = vsyncpa [#allocation5 + $0x1], 1 }
 0x1df   :  { %1300 = vsyncpa [#allocation8], 1 }
 0x1e0   :  { %1301 = vsyncpa [#allocation6], 1 }
 0x1e1   :  { %1303 = vsyncpa [#allocation6 + $0x1], 1 }
 0x1e2   :  { %1304 = vsyncpa [#allocation11], 1 }
 0x1e3   :  { %1306 = vsyncpa [#allocation11 + $0x1], 1 }

</bundles_post_ra>
